<compile_context>
chip_gen: v6e
topology: v6e:2x2x1
jax: 0.10.0
libtpu: 0.0.40
codegen_flags: <defaults>
</compile_context>

<pallas_src>
import jax
import jax.numpy as jnp
from jax.experimental import pallas as pl
from jax.experimental.pallas import tpu as pltpu

MapX = 16
MapY = 16
IN_DIM = MapX * MapY * 27      # 6912
H1 = 512
H2 = 32
OUT_DIM = 6

TK = 2304                      # K-tile for fc1 (6912 / 2304 = 3 reduction steps)
TM_MAX = 256                   # batch tile (MXU row count on v6e/v7x)


def _mlp_kernel(x_ref, w1_ref, b1_ref, w2_ref, b2_ref, w3_ref, b3_ref,
                o_ref, acc_ref):
    k = pl.program_id(1)

    # Init the fc1 accumulator on the first K step of this batch tile.
    @pl.when(k == 0)
    def _():
        acc_ref[...] = jnp.zeros_like(acc_ref)

    # Accumulate one K-slab of fc1:  (TM, TK)bf16 @ (TK, 512)bf16 -> f32 acc.
    acc_ref[...] += jnp.dot(x_ref[...], w1_ref[...],
                            preferred_element_type=jnp.float32)

    # On the last K step, finish the whole MLP (fc2 / out are tiny).
    @pl.when(k == pl.num_programs(1) - 1)
    def _():
        h1 = jnp.maximum(acc_ref[...] + b1_ref[...], 0.0)          # ReLU(fc1)
        h1 = h1.astype(jnp.bfloat16)
        h2 = jnp.dot(h1, w2_ref[...], preferred_element_type=jnp.float32)
        h2 = jnp.maximum(h2 + b2_ref[...], 0.0)                    # ReLU(fc2)
        h2 = h2.astype(jnp.bfloat16)
        y = jnp.dot(h2, w3_ref[...], preferred_element_type=jnp.float32)
        o_ref[...] = (y + b3_ref[...]).astype(o_ref.dtype)


def act_type_net(x, w1, b1, w2, b2, w3, b3):
    """x: (B, 6912). Weights (in, out), biases (1, out).

    Weights should ideally already be bf16 (see init_params); f32 inputs are
    cast here (the x cast is cheap, a per-call f32 W1 cast costs one extra
    HBM pass so prefer storing weights bf16)."""
    B = x.shape[0]
    x = x.astype(jnp.bfloat16)
    w1 = w1.astype(jnp.bfloat16)
    w2 = w2.astype(jnp.bfloat16)
    w3 = w3.astype(jnp.bfloat16)
    b1 = b1.astype(jnp.float32)
    b2 = b2.astype(jnp.float32)
    b3 = b3.astype(jnp.float32)

    tm = min(TM_MAX, B)
    n_m = pl.cdiv(B, tm)
    n_k = IN_DIM // TK

    return pl.pallas_call(
        _mlp_kernel,
        out_shape=jax.ShapeDtypeStruct((B, OUT_DIM), jnp.float32),
        grid_spec=pltpu.PrefetchScalarGridSpec(
            num_scalar_prefetch=0,
            grid=(n_m, n_k),
            in_specs=[
                pl.BlockSpec((tm, TK), lambda i, k: (i, k)),        # x tile
                pl.BlockSpec((TK, H1), lambda i, k: (k, 0)),        # W1 K-slab
                pl.BlockSpec((1, H1), lambda i, k: (0, 0)),         # b1
                pl.BlockSpec((H1, H2), lambda i, k: (0, 0)),        # W2
                pl.BlockSpec((1, H2), lambda i, k: (0, 0)),         # b2
                pl.BlockSpec((H2, OUT_DIM), lambda i, k: (0, 0)),   # W3
                pl.BlockSpec((1, OUT_DIM), lambda i, k: (0, 0)),    # b3
            ],
            out_specs=pl.BlockSpec((tm, OUT_DIM), lambda i, k: (i, 0)),
            scratch_shapes=[pltpu.VMEM((tm, H1), jnp.float32)],
        ),
        compiler_params=pltpu.CompilerParams(
            # batch tiles are independent (megacore-shardable); K is a reduction
            dimension_semantics=("parallel", "arbitrary"),
            vmem_limit_bytes=32 << 20,
        ),
    )(x, w1, b1, w2, b2, w3, b3)


def init_params(key):
    """Deterministic init matching the PyTorch __init__:
    weights ~ N(0, 0.1) (stored bf16, transposed to (in, out));
    biases use the default nn.Linear init U(-1/sqrt(fan_in), 1/sqrt(fan_in))."""
    ks = jax.random.split(key, 6)
    bf16 = jnp.bfloat16
    w1 = (0.1 * jax.random.normal(ks[0], (IN_DIM, H1), jnp.float32)).astype(bf16)
    w2 = (0.1 * jax.random.normal(ks[1], (H1, H2), jnp.float32)).astype(bf16)
    w3 = (0.1 * jax.random.normal(ks[2], (H2, OUT_DIM), jnp.float32)).astype(bf16)
    b1 = jax.random.uniform(ks[3], (1, H1), jnp.float32,
                            -1.0 / jnp.sqrt(IN_DIM), 1.0 / jnp.sqrt(IN_DIM))
    b2 = jax.random.uniform(ks[4], (1, H2), jnp.float32,
                            -1.0 / jnp.sqrt(H1), 1.0 / jnp.sqrt(H1))
    b3 = jax.random.uniform(ks[5], (1, OUT_DIM), jnp.float32,
                            -1.0 / jnp.sqrt(H2), 1.0 / jnp.sqrt(H2))
    return w1, b1, w2, b2, w3, b3


def reference(x, w1, b1, w2, b2, w3, b3):
    """Pure-JAX reference with the same bf16-input / f32-accumulate numerics."""
    def bdot(a, b):
        return jnp.dot(a.astype(jnp.bfloat16), b.astype(jnp.bfloat16),
                       preferred_element_type=jnp.float32)
    h1 = jnp.maximum(bdot(x, w1) + b1, 0.0)
    h2 = jnp.maximum(bdot(h1, w2) + b2, 0.0)
    return bdot(h2, w3) + b3


if __name__ == "__main__":
    key = jax.random.PRNGKey(0)
    kx, kp = jax.random.split(key)

    B = 2
    x = jax.random.normal(kx, (B, IN_DIM), jnp.float32)
    params = init_params(kp)

    out = act_type_net(x, *params)
    out = jax.block_until_ready(out)

    ref = reference(x, *params)
    assert out.shape == (B, OUT_DIM), out.shape
    # bf16 inputs with f32 accumulation; only accumulation-order differences
    # remain vs. the reference, so a modest tolerance suffices.
    assert jnp.allclose(out, ref, atol=5e-2, rtol=5e-2), (
        float(jnp.max(jnp.abs(out - ref))))

    print("KERNEL_OK")
</pallas_src>

<mosaic_0001>
module attributes {stable_mosaic.version = 11 : i64} {
  func.func @_mlp_kernel(%arg0: i32, %arg1: i32, %arg2: memref<2x2304xbf16, #tpu.memory_space<vmem>>, %arg3: memref<2304x512xbf16, #tpu.memory_space<vmem>>, %arg4: memref<1x512xf32, #tpu.memory_space<vmem>>, %arg5: memref<512x32xbf16, #tpu.memory_space<vmem>>, %arg6: memref<1x32xf32, #tpu.memory_space<vmem>>, %arg7: memref<32x6xbf16, #tpu.memory_space<vmem>>, %arg8: memref<1x6xf32, #tpu.memory_space<vmem>>, %arg9: memref<2x6xf32, #tpu.memory_space<vmem>>, %arg10: memref<2x512xf32, #tpu.memory_space<vmem>>) attributes {dimension_semantics = [#tpu.dimension_semantics<parallel>, #tpu.dimension_semantics<arbitrary>], iteration_bounds = array<i64: 1, 3>, scalar_prefetch = 0 : i64, scratch_operands = 1 : i64, tpu.core_type = #tpu.core_type<tc>, window_params = [{transform_indices = @transform_0, window_bounds = array<i64: 2, 2304>}, {transform_indices = @transform_1, window_bounds = array<i64: 2304, 512>}, {pipeline_mode = #tpu.pipeline_mode<synchronous>, transform_indices = @transform_2, window_bounds = array<i64: 1, 512>}, {pipeline_mode = #tpu.pipeline_mode<synchronous>, transform_indices = @transform_3, window_bounds = array<i64: 512, 32>}, {pipeline_mode = #tpu.pipeline_mode<synchronous>, transform_indices = @transform_4, window_bounds = array<i64: 1, 32>}, {pipeline_mode = #tpu.pipeline_mode<synchronous>, transform_indices = @transform_5, window_bounds = array<i64: 32, 6>}, {pipeline_mode = #tpu.pipeline_mode<synchronous>, transform_indices = @transform_6, window_bounds = array<i64: 1, 6>}, {transform_indices = @transform_7, window_bounds = array<i64: 2, 6>}]} {
    %c0_i32 = arith.constant 0 : i32
    %0 = arith.cmpi eq, %arg1, %c0_i32 : i32
    %1 = arith.extui %0 : i1 to i32
    %c0_i32_0 = arith.constant 0 : i32
    %2 = arith.cmpi ne, %1, %c0_i32_0 : i32
    scf.if %2 {
      %cst_9 = arith.constant 0.000000e+00 : f32
      %12 = vector.broadcast %cst_9 : f32 to vector<2x512xf32>
      %c0_10 = arith.constant 0 : index
      %c0_11 = arith.constant 0 : index
      %13 = vector.load %arg10[%c0_10, %c0_11] : memref<2x512xf32, #tpu.memory_space<vmem>>, vector<2x512xf32>
      tpu.vector_store %arg10[%c0_10, %c0_11], %12 {strides = array<i32>} : memref<2x512xf32, #tpu.memory_space<vmem>>, vector<2x512xf32>,
    } else {
    }
    %c0 = arith.constant 0 : index
    %c0_1 = arith.constant 0 : index
    %3 = vector.load %arg10[%c0, %c0_1] : memref<2x512xf32, #tpu.memory_space<vmem>>, vector<2x512xf32>
    %c0_2 = arith.constant 0 : index
    %c0_3 = arith.constant 0 : index
    %4 = vector.load %arg2[%c0_2, %c0_3] : memref<2x2304xbf16, #tpu.memory_space<vmem>>, vector<2x2304xbf16>
    %c0_4 = arith.constant 0 : index
    %c0_5 = arith.constant 0 : index
    %5 = vector.load %arg3[%c0_4, %c0_5] : memref<2304x512xbf16, #tpu.memory_space<vmem>>, vector<2304x512xbf16>
    %cst = arith.constant dense<0.000000e+00> : vector<2x512xf32>
    %6 = tpu.matmul %4, %5, %cst {dimension_numbers = #tpu.dot_dimension_numbers<[1], [0], [0], [1], [0, 0, 1, 1], [], []>} : vector<2x2304xbf16>, vector<2304x512xbf16>, vector<2x512xf32> -> vector<2x512xf32>
    %7 = arith.addf %3, %6 : vector<2x512xf32>
    %c0_6 = arith.constant 0 : index
    %c0_7 = arith.constant 0 : index
    %8 = vector.load %arg10[%c0_6, %c0_7] : memref<2x512xf32, #tpu.memory_space<vmem>>, vector<2x512xf32>
    tpu.vector_store %arg10[%c0_6, %c0_7], %7 {strides = array<i32>} : memref<2x512xf32, #tpu.memory_space<vmem>>, vector<2x512xf32>,
    %c2_i32 = arith.constant 2 : i32
    %9 = arith.cmpi eq, %arg1, %c2_i32 : i32
    %10 = arith.extui %9 : i1 to i32
    %c0_i32_8 = arith.constant 0 : i32
    %11 = arith.cmpi ne, %10, %c0_i32_8 : i32
    scf.if %11 {
      %c0_9 = arith.constant 0 : index
      %c0_10 = arith.constant 0 : index
      %12 = vector.load %arg10[%c0_9, %c0_10] : memref<2x512xf32, #tpu.memory_space<vmem>>, vector<2x512xf32>
      %c0_11 = arith.constant 0 : index
      %c0_12 = arith.constant 0 : index
      %13 = vector.load %arg4[%c0_11, %c0_12] : memref<1x512xf32, #tpu.memory_space<vmem>>, vector<1x512xf32>
      %14 = vector.broadcast %13 : vector<1x512xf32> to vector<2x512xf32>
      %15 = arith.addf %12, %14 : vector<2x512xf32>
      %cst_13 = arith.constant 0.000000e+00 : f32
      %16 = vector.broadcast %cst_13 : f32 to vector<2x512xf32>
      %17 = arith.maximumf %15, %16 : vector<2x512xf32>
      %18 = arith.truncf %17 : vector<2x512xf32> to vector<2x512xbf16>
      %c0_14 = arith.constant 0 : index
      %c0_15 = arith.constant 0 : index
      %19 = vector.load %arg5[%c0_14, %c0_15] : memref<512x32xbf16, #tpu.memory_space<vmem>>, vector<512x32xbf16>
      %cst_16 = arith.constant dense<0.000000e+00> : vector<2x32xf32>
      %20 = tpu.matmul %18, %19, %cst_16 {dimension_numbers = #tpu.dot_dimension_numbers<[1], [0], [0], [1], [0, 0, 1, 1], [], []>} : vector<2x512xbf16>, vector<512x32xbf16>, vector<2x32xf32> -> vector<2x32xf32>
      %c0_17 = arith.constant 0 : index
      %c0_18 = arith.constant 0 : index
      %21 = vector.load %arg6[%c0_17, %c0_18] : memref<1x32xf32, #tpu.memory_space<vmem>>, vector<1x32xf32>
      %22 = vector.broadcast %21 : vector<1x32xf32> to vector<2x32xf32>
      %23 = arith.addf %20, %22 : vector<2x32xf32>
      %cst_19 = arith.constant 0.000000e+00 : f32
      %24 = vector.broadcast %cst_19 : f32 to vector<2x32xf32>
      %25 = arith.maximumf %23, %24 : vector<2x32xf32>
      %26 = arith.truncf %25 : vector<2x32xf32> to vector<2x32xbf16>
      %c0_20 = arith.constant 0 : index
      %c0_21 = arith.constant 0 : index
      %27 = vector.load %arg7[%c0_20, %c0_21] : memref<32x6xbf16, #tpu.memory_space<vmem>>, vector<32x6xbf16>
      %cst_22 = arith.constant dense<0.000000e+00> : vector<2x6xf32>
      %28 = tpu.matmul %26, %27, %cst_22 {dimension_numbers = #tpu.dot_dimension_numbers<[1], [0], [0], [1], [0, 0, 1, 1], [], []>} : vector<2x32xbf16>, vector<32x6xbf16>, vector<2x6xf32> -> vector<2x6xf32>
      %c0_23 = arith.constant 0 : index
      %c0_24 = arith.constant 0 : index
      %29 = vector.load %arg8[%c0_23, %c0_24] : memref<1x6xf32, #tpu.memory_space<vmem>>, vector<1x6xf32>
      %30 = vector.broadcast %29 : vector<1x6xf32> to vector<2x6xf32>
      %31 = arith.addf %28, %30 : vector<2x6xf32>
      %c0_25 = arith.constant 0 : index
      %c0_26 = arith.constant 0 : index
      %32 = vector.load %arg9[%c0_25, %c0_26] : memref<2x6xf32, #tpu.memory_space<vmem>>, vector<2x6xf32>
      tpu.vector_store %arg9[%c0_25, %c0_26], %31 {strides = array<i32>} : memref<2x6xf32, #tpu.memory_space<vmem>>, vector<2x6xf32>,
    } else {
    }
    return
  }
  func.func @transform_0(%arg0: i32, %arg1: i32) -> (i32, i32) {
    %c0_i32 = arith.constant 0 : i32
    return %arg0, %arg1 : i32, i32
  }
  func.func @transform_1(%arg0: i32, %arg1: i32) -> (i32, i32) {
    %c0_i32 = arith.constant 0 : i32
    %c0_i32_0 = arith.constant 0 : i32
    return %arg1, %c0_i32 : i32, i32
  }
  func.func @transform_2(%arg0: i32, %arg1: i32) -> (i32, i32) {
    %c0_i32 = arith.constant 0 : i32
    %c0_i32_0 = arith.constant 0 : i32
    %c0_i32_1 = arith.constant 0 : i32
    return %c0_i32, %c0_i32_0 : i32, i32
  }
  func.func @transform_3(%arg0: i32, %arg1: i32) -> (i32, i32) {
    %c0_i32 = arith.constant 0 : i32
    %c0_i32_0 = arith.constant 0 : i32
    %c0_i32_1 = arith.constant 0 : i32
    return %c0_i32, %c0_i32_0 : i32, i32
  }
  func.func @transform_4(%arg0: i32, %arg1: i32) -> (i32, i32) {
    %c0_i32 = arith.constant 0 : i32
    %c0_i32_0 = arith.constant 0 : i32
    %c0_i32_1 = arith.constant 0 : i32
    return %c0_i32, %c0_i32_0 : i32, i32
  }
  func.func @transform_5(%arg0: i32, %arg1: i32) -> (i32, i32) {
    %c0_i32 = arith.constant 0 : i32
    %c0_i32_0 = arith.constant 0 : i32
    %c0_i32_1 = arith.constant 0 : i32
    return %c0_i32, %c0_i32_0 : i32, i32
  }
  func.func @transform_6(%arg0: i32, %arg1: i32) -> (i32, i32) {
    %c0_i32 = arith.constant 0 : i32
    %c0_i32_0 = arith.constant 0 : i32
    %c0_i32_1 = arith.constant 0 : i32
    return %c0_i32, %c0_i32_0 : i32, i32
  }
  func.func @transform_7(%arg0: i32, %arg1: i32) -> (i32, i32) {
    %c0_i32 = arith.constant 0 : i32
    %c0_i32_0 = arith.constant 0 : i32
    return %arg0, %c0_i32 : i32, i32
  }
}

</mosaic_0001>

<bundles_post_ra>
// kernel: tpu_custom_call.1
= control target key start
LH: loop header
LB: loop body
LE: loop exit
PB: predicated region body
PF: predicated region fallthrough
CT: control target
= control target key end

     0   :  { %s8392_s0 = inlined_call_operand.hbm [shape: bf16[2,6912], index: 0, kind: input, shape index: {}]   ;;  %s8393_s1 = inlined_call_operand.hbm [shape: bf16[6912,512], index: 1, kind: input, shape index: {}]   ;;  %s8394_s2 = inlined_call_operand.hbm [shape: f32[1,512], index: 2, kind: input, shape index: {}]   ;;  %s8395_s3 = inlined_call_operand.vmem [shape: bf16[512,32], index: 3, kind: input, shape index: {}]   ;;  %s8396_s4 = inlined_call_operand.hbm [shape: f32[1,32], index: 4, kind: input, shape index: {}]   ;;  %s8397_s5 = inlined_call_operand.vmem [shape: bf16[32,6], index: 5, kind: input, shape index: {}]   ;;  %s8398_s6 = inlined_call_operand.hbm [shape: f32[1,6], index: 6, kind: input, shape index: {}]   ;;  %s8399_s7 = inlined_call_operand.hbm [shape: f32[2,6], index: 7, kind: output, shape index: {}]  }
   0x1   :  { %8402 = sst [smem:[#allocation18_spill]] %s8392_s0 }
   0x2   :  { %8403 = sst [smem:[#allocation19_spill]] %s8394_s2 }
   0x3   :  { %8404 = sst [smem:[#allocation20_spill]] %s8396_s4 }
   0x4   :  { %8405 = sst [smem:[#allocation21_spill]] %s8398_s6 }
   0x5   :  { %12 = vsyncpa [#allocation4], 0 }
   0x6   :  { %14 = vsyncpa [#allocation4 + $0x1], 0 }
   0x7   :  { %15 = vsyncpa [#allocation7], 0 }
   0x8   :  { %17 = vsyncpa [#allocation7 + $0x1], 0 }
   0x9   :  { %18 = vsyncpa [#allocation10], 0 }
   0xa   :  { %19 = vsyncpa [#allocation5], 0  ;;  %s7340_s24 = smov 0   ;;  %s7342_s25 = smov 0  }
   0xb   :  { %s7344_s26 = smov 0   ;;  %s7346_s27 = smov 0  }
   0xc   :  { %s7348_s28 = smov 0   ;;  %s7350_s29 = smov 0  }
   0xd LB: > { %s7369_s30 = sadd.s32 4294967295, %s7285_s29   ;;  %p59_p0 = scmp.ne.s32.totalorder %s7269_s25, %s7265_s24  ;;  %s7285_s29 = sphi %s7350_s29, %s25_s29   ;;  %s7281_s28 = sphi %s7348_s28, %s8423_s28   ;;  %s7277_s27 = sphi %s7346_s27, %s8422_s27   ;;  %s7273_s26 = sphi %s7344_s26, %s8421_s26   ;;  %s7269_s25 = sphi %s7342_s25, %s8420_s25   ;;  %s7265_s24 = sphi %s7340_s24, %s8419_s24  }
   0xe   : > { %p8400_p1 = scmp.eq.s32.totalorder %s7369_s30, 0  ;;  %p5361_p2 = scmp.ge.s32.totalorder %s7285_s29, 1 }
   0xf   : > { %p227_p3 = scmp.lt.s32.totalorder %s7285_s29, 4  ;;  %s7287_s10 = smov [#allocation8]  }
  0x10   : > { %p7377_p4 = por %p8400_p1, %p59_p0  ;;  %s240_s11 = sshll.u32 %s7287_s10, 4  ;;  %s241_s11 = int_to_ptr.vmem [resolvable:$true] %s240_s11 }
  0x11   : > { %p7381_p5 = pnand %p5361_p2, %p227_p3  ;;  %s7288_s12 = smov [#allocation9]  }
  0x12   : > { %s8406_s8 = scalar_select %p7377_p4, 1, 0 }
  0x13   : > { %p6076_p6 = pneg %p7381_p5  ;;  %s254_s13 = sshll.u32 %s7288_s12, 4  ;;  %s255_s13 = int_to_ptr.vmem [resolvable:$true] %s254_s13 }
  0x14   : > { %s7289_s15 = smov [#allocation11]   ;;  %s7072_s17 = scalar_lea.vmem %s241_s11, 64 }
  0x15   : > { %p7389_p7 = pnand %p6076_p6, %p8400_p1  ;;  %s268_s16 = sshll.u32 %s7289_s15, 4  ;;  %s7393_s16 = int_to_ptr.vmem [resolvable:$true] %s268_s16 }
  0x16   : > { %p7073_p9 = scmp.ne.s32.totalorder %s241_s11, %s7072_s17  ;;  %p7080_p12 = scmp.lt.s32.totalorder %s241_s11, %s241_s11 }
  0x17   : > { %p7063_p8 = pneg %p7389_p7  ;;  %p7081_p13 = scmp.lt.s32.totalorder %s7072_s17, %s7072_s17 }
  0x19   : > { %p7075_p10 = pnand %p7073_p9, %p7063_p8  ;;  %p7082_p0 = por %p7081_p13, %p7080_p12 }
  0x1b   : > { %p7076_p11 = pneg %p7075_p10 }
  0x1d   : > { %p7083_p2 = pnand %p7082_p0, %p7076_p11 }
  0x1f   : > { %7086 = shalt.err (!%p7083_p2)
}
  0x20   : > { %s8409_s2 = sld [smem:[#allocation19_spill]]  ;;  %s7098_s20 = scalar_lea.vmem %s255_s13, 16 }
  0x21   : > { %p7099_p3 = scmp.ne.s32.totalorder %s255_s13, %s7098_s20  ;;  %s7105_s21 = scalar_lea.vmem %s255_s13, 32 }
  0x22   : > { %p7106_p9 = scmp.lt.s32.totalorder %s255_s13, %s255_s13  ;;  %p7107_p10 = scmp.lt.s32.totalorder %s7105_s21, %s7098_s20 }
  0x23   : > { %p7101_p6 = pnand %p7099_p3, %p7063_p8 }
  0x24   : > { %p7108_p4 = por %p7107_p10, %p7106_p9 }
  0x25   : > { %p7102_p1 = pneg %p7101_p6 }
  0x26   : > { %6079 = dma.hbm_to_vmem [thread:$0]  (!%p7389_p7), %s8409_s2, 64, %s241_s11, [#allocation7]  }
  0x27   : > { %p7109_p12 = pnand %p7108_p4, %p7102_p1 }
  0x29   : > { %7112 = shalt.err (!%p7109_p12)
}
  0x2a   : > { %s8410_s4 = sld [smem:[#allocation20_spill]]  ;;  %s7124_s24 = scalar_lea.vmem %s7393_s16, 16 }
  0x2b   : > { %p7125_p11 = scmp.ne.s32.totalorder %s7393_s16, %s7124_s24  ;;  %s7131_s10 = scalar_lea.vmem %s7393_s16, 32 }
  0x2c   : > { %p7132_p1 = scmp.lt.s32.totalorder %s7393_s16, %s7393_s16  ;;  %p7133_p4 = scmp.lt.s32.totalorder %s7131_s10, %s7124_s24 }
  0x2d   : > { %p7127_p13 = pnand %p7125_p11, %p7063_p8 }
  0x2e   : > { %p7134_p2 = por %p7133_p4, %p7132_p1 }
  0x2f   : > { %p7128_p0 = pneg %p7127_p13 }
  0x30   : > { %6082 = dma.hbm_to_vmem [thread:$0]  (!%p7389_p7), %s8410_s4, 16, %s255_s13, [#allocation10]  }
  0x31   : > { %p7135_p3 = pnand %p7134_p2, %p7128_p0 }
  0x33   : > { %7138 = shalt.err (!%p7135_p3)
}
  0x34   : > { %s8411_s6 = sld [smem:[#allocation21_spill]]  ;;  %s46_s13 = sadd.s32 1, %s7273_s26 }
  0x35   : > { %s34_s15 = sadd.s32 1, %s7281_s28  ;;  %p53_p8 = scmp.ne.s32.totalorder %s7273_s26, %s7269_s25 }
  0x36   : > { %p35_p6 = scmp.ge.s32.totalorder %s34_s15, 3  ;;  %p54_p9 = scmp.eq.s32.totalorder %s7285_s29, 0 }
  0x37   : > { %p6096_p10 = scmp.lt.s32.totalorder %s7285_s29, 3  ;;  %s7434_s14 = sand.u32 1, %s7273_s26  }
  0x38   : > { %s8425_s15 = smov (%p35_p6, %s34_s15), 0  ;;  %p55_p12 = por %p54_p9, %p53_p8 }
  0x39   : > { %s42_s17 = ssub.s32 %s7281_s28, %s8425_s15  ;;  %s6052_s18 = smul.u32 18, %s7434_s14 }
  0x3a   : > { %6085 = dma.hbm_to_vmem [thread:$0]  (!%p7389_p7), %s8411_s6, 16, %s7393_s16, [#allocation10]  }
  0x3b   : > { %p44_p11 = scmp.eq.s32.totalorder %s42_s17, 0  ;;  %s5993_s19 = smul.u32 288, %s7281_s28 }
  0x3c   : > { %p7442_p13 = pnand %p6096_p10, %p55_p12  ;;  %s8413_s0 = sld [smem:[#allocation18_spill]] }
  0x3d   : > { %s7447_s20 = scalar_select %p44_p11, %s7273_s26, %s46_s13  }
  0x3e   : > { %s283_s24 = scalar_lea.vmem [#allocation3], %s6052_s18  ;;  %s280_s11 = scalar_lea.sflag [#allocation4], %s7434_s14 }
  0x3f   : > { %s293_s10 = sshll.u32 %s283_s24, 4  ;;  %p7141_p7 = pneg %p7442_p13  ;;  %s294_s10 = int_to_ptr.vmem [resolvable:$true] %s293_s10 }
  0x40   : > { %s7152_s12 = scalar_lea.vmem %s294_s10, 288  ;;  %s7290_s17 = smov [#allocation3]  }
  0x41   : > { %p7153_p0 = scmp.ne.s32.totalorder %s294_s10, %s7152_s12  ;;  %s7157_s2 = sshll.u32 %s7290_s17, 4  ;;  %s7158_s2 = int_to_ptr.vmem [resolvable:$false] %s7157_s2 }
  0x42   : > { %s291_s23 = scalar_lea.hbm %s8413_s0, %s5993_s19  ;;  %s7159_s13 = scalar_lea.vmem %s7158_s2, 576 }
  0x43   : > { %p7155_p1 = pnand %p7153_p0, %p7141_p7  ;;  %p7160_p2 = scmp.lt.s32.totalorder %s294_s10, %s7158_s2 }
  0x44   : > { %p7161_p3 = scmp.lt.s32.totalorder %s7159_s13, %s7152_s12 }
  0x45   : > { %p7156_p4 = pneg %p7155_p1 }
  0x46   : > { %p7162_p8 = por %p7161_p3, %p7160_p2 }
  0x48   : > { %p7163_p6 = pnand %p7162_p8, %p7156_p4 }
  0x4a   : > { %7166 = shalt.err (!%p7163_p6)
}
  0x4b   : > { %6089 = dma.hbm_to_vmem [thread:$0]  (!%p7442_p13), %s291_s23, 288, %s294_s10, %s280_s11  }
  0x4c   : > { %s6053_s18 = smul.u32 4608, %s7434_s14  ;;  %s300_s19 = sand.u32 1, %s7285_s29  }
  0x4d   : > { %s5996_s21 = smul.u32 73728, %s7281_s28  ;;  %s301_s12 = scalar_lea.sflag [#allocation7], %s300_s19 }
  0x4e   : > { %s304_s22 = scalar_lea.vmem [#allocation6], %s6053_s18  ;;  %s7291_s4 = smov [#allocation6]  }
  0x4f   : > { %s312_s24 = sshll.u32 %s304_s22, 4  ;;  %s311_s2 = scalar_lea.hbm %s8393_s1, %s5996_s21  ;;  %s313_s24 = int_to_ptr.vmem [resolvable:$true] %s312_s24 }
  0x50   : > { %s7180_s13 = scalar_lea.vmem %s313_s24, 73728  ;;  %s7185_s6 = sshll.u32 %s7291_s4, 4  ;;  %s7186_s6 = int_to_ptr.vmem [resolvable:$false] %s7185_s6 }
  0x51   : > { %p7181_p9 = scmp.ne.s32.totalorder %s313_s24, %s7180_s13  ;;  %s7187_s14 = scalar_lea.vmem %s7186_s6, 147456 }
  0x52   : > { %p7188_p11 = scmp.lt.s32.totalorder %s313_s24, %s7186_s6  ;;  %p7189_p0 = scmp.lt.s32.totalorder %s7187_s14, %s7180_s13 }
  0x53   : > { %p7183_p10 = pnand %p7181_p9, %p7141_p7 }
  0x54   : > { %p7190_p1 = por %p7189_p0, %p7188_p11 }
  0x55   : > { %p7184_p12 = pneg %p7183_p10 }
  0x57   : > { %p7191_p4 = pnand %p7190_p1, %p7184_p12 }
  0x59   : > { %7194 = shalt.err (!%p7191_p4)
}
  0x5a   : > { %s7292_s23 = smov 256   ;;  %s7293_s0 = smov 16  }
  0x5b   : > { %6092 = dma.hbm_to_vmem [thread:$0]  (!%p7442_p13), %s311_s2, 73728, %s313_s24, %s301_s12, %s7292_s23, %s7292_s23, %s7293_s0  }
  0x5c   : > { %324 = sbr.rel (%p7381_p5) target bundleno = 1355 (0x54b), region = 48  ;;  %s326_s10 = sand.u32 (!%p7381_p5), 1, %s7269_s25  }
  0x5d   : > { %s6054_s11 = smul.u32 (!%p7381_p5), 18, %s326_s10  ;;  %s327_s4 = scalar_lea.sflag (!%p7381_p5), [#allocation4], %s326_s10 }
  0x5e   : > { %p8414_p7 = scmp.ne.s32.totalorder (!%p7381_p5), %s8406_s8, 0 }
  0x5f   : > { %s7474_s18 = scalar_lea.vmem (!%p7381_p5), [#allocation3], %s6054_s11 }
  0x61   : > { %7244 = dma.done.wait (%p8414_p7), %s327_s4, 288  }
  0x62   : > { %7246 = vsyncadd (%p8414_p7), %s327_s4, 4294967008  ;;  %s335_s6 = sand.u32 1, %s7369_s30   ;;  %s6055_s16 = smul.u32 4608, %s326_s10 }
  0x63   : > { %s336_s19 = scalar_lea.sflag [#allocation7], %s335_s6 }
  0x64   : > { %s7481_s21 = scalar_lea.vmem [#allocation6], %s6055_s16 }
  0x65   : > { %7248 = dma.done.wait (%p8414_p7), %s336_s19, 73728  }
  0x66   : > { %7250 = vsyncadd (%p8414_p7), %s336_s19, 4294893568  ;;  %p8415_p5 = scmp.eq.s32.totalorder %s7369_s30, 0 }
  0x68   : > { %7252 = dma.done.wait (%p8415_p5), [#allocation7], 64   ;;  %p8416_p13 = pmov %p8415_p5 }
  0x69   : > { %p8417_p2 = pmov %p8415_p5 }
  0x6a   : > { %7254 = vsyncadd (%p8416_p13), [#allocation7], 4294967232 }
  0x6b   : > { %7256 = dma.done.wait (%p8417_p2), [#allocation10], 32   ;;  %p8418_p3 = pmov %p8417_p2 }
  0x6c   : > { %p5373_p8 = scmp.ne.s32.totalorder %s7277_s27, 0 }
  0x6d   : > { %7258 = vsyncadd (%p8418_p3), [#allocation10], 4294967264 }
  0x6e   : > { %388 = sbr.rel (%p5373_p8) target bundleno = 117 (0x75), region = 72 }
  0x73   : > { %v7294_v0 = vmov 0.0  }
  0x74   : > { %389 = vst [vmem:[#allocation2] sm:$0xff] %v7294_v0 }
  0x75 PF: > { %v6161_v1 = vld [vmem:[%s7481_s21 + $0xe4] ss:$16 sps:$4 sm:$0xff]   ;;  %v6165_v3 = vld [vmem:[%s7481_s21 + $0xe0] ss:$16 sps:$4 sm:$0xff]   ;;  %v7295_v37 = vmov 1966171168   ;;  %v977_v39 = vlaneseq }
  0x76   : > { %v6163_v2 = vld [vmem:[%s7481_s21 + $0x2e4] ss:$16 sps:$4 sm:$0xff]   ;;  %3991 = vmatprep.subr.bf16.mxu0 %v6161_v1  ;;  %v6166_v4 = vld [vmem:[%s7481_s21 + $0x2e0] ss:$16 sps:$4 sm:$0xff]   ;;  %v975_v38 = vunpack.c.l.s4 %v7295_v37  ;;  %p5951_p6 = scmp.ne.s32.totalorder %s7277_s27, 2 }
  0x77   : > { %4032 = vmatprep.subr.bf16.mxu1 %v6163_v2  ;;  %v6167_v5 = vld [vmem:[%s7481_s21 + $0xc4] ss:$16 sps:$4 sm:$0xff]   ;;  %3992 = vmatpush1.bf16.msra.mxu0 %v6165_v3  ;;  %v6171_v7 = vld [vmem:[%s7481_s21 + $0xc0] ss:$16 sps:$4 sm:$0xff]   ;;  %v7535_v44 = vshrl.u32 %v977_v39, 7 }
  0x78   : > { %4033 = vmatpush1.bf16.msra.mxu1 %v6166_v4  ;;  %v6169_v6 = vld [vmem:[%s7481_s21 + $0x2c4] ss:$16 sps:$4 sm:$0xff]   ;;  %3993 = vmatprep.subr.bf16.mxu0 %v6167_v5  ;;  %v6172_v8 = vld [vmem:[%s7481_s21 + $0x2c0] ss:$16 sps:$4 sm:$0xff]   ;;  %v976_v43 = vunpack.c.0.s8 %v975_v38 }
  0x79   : > { %4034 = vmatprep.subr.bf16.mxu1 %v6169_v6  ;;  %v6173_v9 = vld [vmem:[%s7481_s21 + $0xa4] ss:$16 sps:$4 sm:$0xff]   ;;  %v6177_v11 = vld [vmem:[%s7481_s21 + $0xa0] ss:$16 sps:$4 sm:$0xff]  }
  0x7a   : > { %v6175_v10 = vld [vmem:[%s7481_s21 + $0x2a4] ss:$16 sps:$4 sm:$0xff]   ;;  %v6178_v12 = vld [vmem:[%s7481_s21 + $0x2a0] ss:$16 sps:$4 sm:$0xff]   ;;  %v7543_v50 = vsub.s32 %v976_v43, %v7535_v44 }
  0x7b   : > { %3994 = vmatpush1.bf16.msra.mxu0 %v6171_v7  ;;  %v6179_v13 = vld [vmem:[%s7481_s21 + $0x84] ss:$16 sps:$4 sm:$0xff]   ;;  %v6183_v15 = vld [vmem:[%s7481_s21 + $0x80] ss:$16 sps:$4 sm:$0xff]  }
  0x7c   : > { %4035 = vmatpush1.bf16.msra.mxu1 %v6172_v8  ;;  %3995 = vmatprep.subr.bf16.mxu0 %v6173_v9  ;;  %v6181_v14 = vld [vmem:[%s7481_s21 + $0x284] ss:$16 sps:$4 sm:$0xff]   ;;  %v6184_v16 = vld [vmem:[%s7481_s21 + $0x280] ss:$16 sps:$4 sm:$0xff]  }
  0x7d   : > { %4036 = vmatprep.subr.bf16.mxu1 %v6175_v10  ;;  %v6185_v17 = vld [vmem:[%s7481_s21 + $0x64] ss:$16 sps:$4 sm:$0xff]   ;;  %v6189_v19 = vld [vmem:[%s7481_s21 + $0x60] ss:$16 sps:$4 sm:$0xff]  }
  0x7e   : > { %v6187_v18 = vld [vmem:[%s7481_s21 + $0x264] ss:$16 sps:$4 sm:$0xff]   ;;  %v6190_v20 = vld [vmem:[%s7481_s21 + $0x260] ss:$16 sps:$4 sm:$0xff]  }
  0x7f   : > { %3996 = vmatpush1.bf16.msra.mxu0 %v6177_v11  ;;  %v6191_v21 = vld [vmem:[%s7481_s21 + $0x44] ss:$16 sps:$4 sm:$0xff]   ;;  %v6195_v23 = vld [vmem:[%s7481_s21 + $0x40] ss:$16 sps:$4 sm:$0xff]  }
  0x80   : > { %4037 = vmatpush1.bf16.msra.mxu1 %v6178_v12  ;;  %3997 = vmatprep.subr.bf16.mxu0 %v6179_v13  ;;  %v6193_v22 = vld [vmem:[%s7481_s21 + $0x244] ss:$16 sps:$4 sm:$0xff]   ;;  %v6196_v24 = vld [vmem:[%s7481_s21 + $0x240] ss:$16 sps:$4 sm:$0xff]  }
  0x81   : > { %4038 = vmatprep.subr.bf16.mxu1 %v6181_v14  ;;  %v6197_v25 = vld [vmem:[%s7481_s21 + $0x24] ss:$16 sps:$4 sm:$0xff]   ;;  %v6201_v27 = vld [vmem:[%s7481_s21 + $0x20] ss:$16 sps:$4 sm:$0xff]  }
  0x82   : > { %v6199_v26 = vld [vmem:[%s7481_s21 + $0x224] ss:$16 sps:$4 sm:$0xff]   ;;  %v6202_v28 = vld [vmem:[%s7481_s21 + $0x220] ss:$16 sps:$4 sm:$0xff]  }
  0x83   : > { %3998 = vmatpush1.bf16.msra.mxu0 %v6183_v15  ;;  %v6203_v29 = vld [vmem:[%s7481_s21 + $0x4] ss:$16 sps:$4 sm:$0xff]   ;;  %v6207_v31 = vld [vmem:[%s7481_s21] ss:$16 sps:$4 sm:$0xff]  }
  0x84   : > { %4039 = vmatpush1.bf16.msra.mxu1 %v6184_v16  ;;  %3999 = vmatprep.subr.bf16.mxu0 %v6185_v17  ;;  %v6205_v30 = vld [vmem:[%s7481_s21 + $0x204] ss:$16 sps:$4 sm:$0xff]   ;;  %v6208_v32 = vld [vmem:[%s7481_s21 + $0x200] ss:$16 sps:$4 sm:$0xff]  }
  0x85   : > { %4040 = vmatprep.subr.bf16.mxu1 %v6187_v18  ;;  %v6209_v33 = vld [vmem:[%s7481_s21 + $0x1e4] ss:$16 sps:$4 sm:$0xff]   ;;  %v6213_v35 = vld [vmem:[%s7481_s21 + $0x1e0] ss:$16 sps:$4 sm:$0xff]  }
  0x86   : > { %v6211_v34 = vld [vmem:[%s7481_s21 + $0x3e4] ss:$16 sps:$4 sm:$0xff]   ;;  %v6214_v36 = vld [vmem:[%s7481_s21 + $0x3e0] ss:$16 sps:$4 sm:$0xff]  }
  0x87   : > { %4000 = vmatpush1.bf16.msra.mxu0 %v6189_v19  ;;  %v6215_v40 = vld [vmem:[%s7481_s21 + $0x1c4] ss:$16 sps:$4 sm:$0xff]   ;;  %v6219_v42 = vld [vmem:[%s7481_s21 + $0x1c0] ss:$16 sps:$4 sm:$0xff]  }
  0x88   : > { %4041 = vmatpush1.bf16.msra.mxu1 %v6190_v20  ;;  %4001 = vmatprep.subr.bf16.mxu0 %v6191_v21  ;;  %v6217_v41 = vld [vmem:[%s7481_s21 + $0x3c4] ss:$16 sps:$4 sm:$0xff]   ;;  %v6220_v45 = vld [vmem:[%s7481_s21 + $0x3c0] ss:$16 sps:$4 sm:$0xff]  }
  0x89   : > { %4042 = vmatprep.subr.bf16.mxu1 %v6193_v22  ;;  %v6221_v46 = vld [vmem:[%s7481_s21 + $0x1a4] ss:$16 sps:$4 sm:$0xff]   ;;  %v6225_v48 = vld [vmem:[%s7481_s21 + $0x1a0] ss:$16 sps:$4 sm:$0xff]  }
  0x8a   : > { %v6223_v47 = vld [vmem:[%s7481_s21 + $0x3a4] ss:$16 sps:$4 sm:$0xff]   ;;  %v6226_v49 = vld [vmem:[%s7481_s21 + $0x3a0] ss:$16 sps:$4 sm:$0xff]  }
  0x8b   : > { %4002 = vmatpush1.bf16.msra.mxu0 %v6195_v23  ;;  %v6227_v51 = vld [vmem:[%s7481_s21 + $0x184] ss:$16 sps:$4 sm:$0xff]   ;;  %v6231_v54 = vld [vmem:[%s7481_s21 + $0x180] ss:$16 sps:$4 sm:$0xff]  }
  0x8c   : > { %4043 = vmatpush1.bf16.msra.mxu1 %v6196_v24  ;;  %4003 = vmatprep.subr.bf16.mxu0 %v6197_v25  ;;  %v6229_v52 = vld [vmem:[%s7481_s21 + $0x384] ss:$16 sps:$4 sm:$0xff]   ;;  %v6232_v56 = vld [vmem:[%s7481_s21 + $0x380] ss:$16 sps:$4 sm:$0xff]  }
  0x8d   : > { %4044 = vmatprep.subr.bf16.mxu1 %v6199_v26  ;;  %v391_v53 = vld [vmem:[%s7474_s18] sm:$0xff] }
  0x8e   : > { %v980_v55 = vrot.slane %v391_v53, %v7543_v50  ;;  %v6233_v57 = vld [vmem:[%s7481_s21 + $0x164] ss:$16 sps:$4 sm:$0xff]   ;;  %v6237_v60 = vld [vmem:[%s7481_s21 + $0x160] ss:$16 sps:$4 sm:$0xff]   ;;  %v973_v2 = vcombine.high %v391_v53, %v391_v53 }
  0x8f   : > { %4004 = vmatpush1.bf16.msra.mxu0 %v6201_v27  ;;  %v6235_v58 = vld [vmem:[%s7481_s21 + $0x364] ss:$16 sps:$4 sm:$0xff]   ;;  %v6238_v62 = vld [vmem:[%s7481_s21 + $0x360] ss:$16 sps:$4 sm:$0xff]  }
  0x90   : > { %4045 = vmatpush1.bf16.msra.mxu1 %v6202_v28  ;;  %4005 = vmatprep.subr.bf16.mxu0 %v6203_v29  ;;  %v988_v59 = vcombine.high %v980_v55, %v980_v55  ;;  %v6239_v63 = vld [vmem:[%s7481_s21 + $0x144] ss:$16 sps:$4 sm:$0xff]   ;;  %v6243_v3 = vld [vmem:[%s7481_s21 + $0x140] ss:$16 sps:$4 sm:$0xff]   ;;  %v7571_v7 = vrot.slane %v973_v2, %v7543_v50  ;;  %v7581_v14 = vrot.slane %v980_v55, %v7543_v50 }
  0x91   : > { %4046 = vmatprep.subr.bf16.mxu1 %v6205_v30  ;;  %v6241_v0 = vld [vmem:[%s7481_s21 + $0x344] ss:$16 sps:$4 sm:$0xff]   ;;  %v6244_v4 = vld [vmem:[%s7481_s21 + $0x340] ss:$16 sps:$4 sm:$0xff]  }
  0x92   : > { %v7555_v61 = vrot.slane %v988_v59, %v7543_v50  ;;  %v6245_v5 = vld [vmem:[%s7481_s21 + $0x124] ss:$16 sps:$4 sm:$0xff]   ;;  %v6249_v8 = vld [vmem:[%s7481_s21 + $0x120] ss:$16 sps:$4 sm:$0xff]   ;;  %v989_v12 = vcombine.high %v7571_v7, %v7571_v7  ;;  %v7591_v19 = vcombine.high %v7581_v14, %v7581_v14 }
  0x93   : > { %4006 = vmatpush1.bf16.msra.mxu0 %v6207_v31  ;;  %v6247_v6 = vld [vmem:[%s7481_s21 + $0x324] ss:$16 sps:$4 sm:$0xff]   ;;  %v6250_v9 = vld [vmem:[%s7481_s21 + $0x320] ss:$16 sps:$4 sm:$0xff]  }
  0x94   : > { %4047 = vmatpush1.bf16.msra.mxu1 %v6208_v32  ;;  %4007 = vmatprep.subr.bf16.mxu0 %v6209_v33  ;;  %v7562_v1 = vcombine.high %v7555_v61, %v7555_v61  ;;  %v6251_v10 = vld [vmem:[%s7481_s21 + $0x104] ss:$16 sps:$4 sm:$0xff]   ;;  %v6255_v13 = vld [vmem:[%s7481_s21 + $0x100] ss:$16 sps:$4 sm:$0xff]   ;;  %v7587_v18 = vrot.slane %v989_v12, %v7543_v50 }
  0x95   : > { %4048 = vmatprep.subr.bf16.mxu1 %v6211_v34  ;;  %4023 = vmatprep.mubr.bf16.mxu0 %v7555_v61  ;;  %v6253_v11 = vld [vmem:[%s7481_s21 + $0x304] ss:$16 sps:$4 sm:$0xff]   ;;  %v6256_v15 = vld [vmem:[%s7481_s21 + $0x300] ss:$16 sps:$4 sm:$0xff]  }
  0x96   : > { %4064 = vmatprep.mubr.bf16.mxu1 %v7562_v1  ;;  %v6259_v16 = vld [vmem:[%s7481_s21 + $0x4e4] ss:$16 sps:$4 sm:$0xff]   ;;  %v6257_v20 = vld [vmem:[%s7481_s21 + $0x4e0] ss:$16 sps:$4 sm:$0xff]   ;;  %v7599_v24 = vcombine.high %v7587_v18, %v7587_v18 }
  0x97   : > { %4008 = vmatpush2.bf16.msra.mxu0 %v6213_v35  ;;  %v6262_v17 = vld [vmem:[%s7481_s21 + $0x6e4] ss:$16 sps:$4 sm:$0xff]   ;;  %v6260_v21 = vld [vmem:[%s7481_s21 + $0x6e0] ss:$16 sps:$4 sm:$0xff]  }
  0x98   : > { %4049 = vmatpush2.bf16.msra.mxu1 %v6214_v36  ;;  %4009 = vmatprep.subr.bf16.mxu0 %v6215_v40  ;;  %v6265_v22 = vld [vmem:[%s7481_s21 + $0x4c4] ss:$16 sps:$4 sm:$0xff]   ;;  %v6263_v25 = vld [vmem:[%s7481_s21 + $0x4c0] ss:$16 sps:$4 sm:$0xff]  }
  0x99   : > { %4050 = vmatprep.subr.bf16.mxu1 %v6217_v41  ;;  %v6268_v23 = vld [vmem:[%s7481_s21 + $0x6c4] ss:$16 sps:$4 sm:$0xff]   ;;  %v6266_v26 = vld [vmem:[%s7481_s21 + $0x6c0] ss:$16 sps:$4 sm:$0xff]  }
  0x9a   : > { %v6271_v27 = vld [vmem:[%s7481_s21 + $0x4a4] ss:$16 sps:$4 sm:$0xff]   ;;  %v6269_v29 = vld [vmem:[%s7481_s21 + $0x4a0] ss:$16 sps:$4 sm:$0xff]  }
  0x9b   : > { %4010 = vmatpush2.bf16.msra.mxu0 %v6219_v42  ;;  %v6274_v28 = vld [vmem:[%s7481_s21 + $0x6a4] ss:$16 sps:$4 sm:$0xff]   ;;  %v6272_v30 = vld [vmem:[%s7481_s21 + $0x6a0] ss:$16 sps:$4 sm:$0xff]  }
  0x9c   : > { %4051 = vmatpush2.bf16.msra.mxu1 %v6220_v45  ;;  %4011 = vmatprep.subr.bf16.mxu0 %v6221_v46  ;;  %v6277_v31 = vld [vmem:[%s7481_s21 + $0x484] ss:$16 sps:$4 sm:$0xff]   ;;  %v6275_v33 = vld [vmem:[%s7481_s21 + $0x480] ss:$16 sps:$4 sm:$0xff]  }
  0x9d   : > { %4052 = vmatprep.subr.bf16.mxu1 %v6223_v47  ;;  %v6280_v32 = vld [vmem:[%s7481_s21 + $0x684] ss:$16 sps:$4 sm:$0xff]   ;;  %v6278_v34 = vld [vmem:[%s7481_s21 + $0x680] ss:$16 sps:$4 sm:$0xff]  }
  0x9e   : > { %v6283_v35 = vld [vmem:[%s7481_s21 + $0x464] ss:$16 sps:$4 sm:$0xff]   ;;  %v6281_v37 = vld [vmem:[%s7481_s21 + $0x460] ss:$16 sps:$4 sm:$0xff]  }
  0x9f   : > { %4012 = vmatpush2.bf16.msra.mxu0 %v6225_v48  ;;  %v6286_v36 = vld [vmem:[%s7481_s21 + $0x664] ss:$16 sps:$4 sm:$0xff]   ;;  %v6284_v38 = vld [vmem:[%s7481_s21 + $0x660] ss:$16 sps:$4 sm:$0xff]  }
  0xa0   : > { %4053 = vmatpush2.bf16.msra.mxu1 %v6226_v49  ;;  %4013 = vmatprep.subr.bf16.mxu0 %v6227_v51  ;;  %v6289_v39 = vld [vmem:[%s7481_s21 + $0x444] ss:$16 sps:$4 sm:$0xff]   ;;  %v6287_v41 = vld [vmem:[%s7481_s21 + $0x440] ss:$16 sps:$4 sm:$0xff]  }
  0xa1   : > { %4054 = vmatprep.subr.bf16.mxu1 %v6229_v52  ;;  %v6292_v40 = vld [vmem:[%s7481_s21 + $0x644] ss:$16 sps:$4 sm:$0xff]   ;;  %v6290_v42 = vld [vmem:[%s7481_s21 + $0x640] ss:$16 sps:$4 sm:$0xff]  }
  0xa2   : > { %v6295_v43 = vld [vmem:[%s7481_s21 + $0x424] ss:$16 sps:$4 sm:$0xff]   ;;  %v6293_v46 = vld [vmem:[%s7481_s21 + $0x420] ss:$16 sps:$4 sm:$0xff]  }
  0xa3   : > { %4014 = vmatpush2.bf16.msra.mxu0 %v6231_v54  ;;  %v6298_v45 = vld [vmem:[%s7481_s21 + $0x624] ss:$16 sps:$4 sm:$0xff]   ;;  %v6296_v47 = vld [vmem:[%s7481_s21 + $0x620] ss:$16 sps:$4 sm:$0xff]  }
  0xa4   : > { %4055 = vmatpush2.bf16.msra.mxu1 %v6232_v56  ;;  %4015 = vmatprep.subr.bf16.mxu0 %v6233_v57  ;;  %v6301_v48 = vld [vmem:[%s7481_s21 + $0x404] ss:$16 sps:$4 sm:$0xff]   ;;  %v6299_v51 = vld [vmem:[%s7481_s21 + $0x400] ss:$16 sps:$4 sm:$0xff]  }
  0xa5   : > { %4056 = vmatprep.subr.bf16.mxu1 %v6235_v58  ;;  %v6304_v49 = vld [vmem:[%s7481_s21 + $0x604] ss:$16 sps:$4 sm:$0xff]   ;;  %v6302_v52 = vld [vmem:[%s7481_s21 + $0x600] ss:$16 sps:$4 sm:$0xff]  }
  0xa6   : > { %v6307_v53 = vld [vmem:[%s7481_s21 + $0x5e4] ss:$16 sps:$4 sm:$0xff]   ;;  %v6305_v55 = vld [vmem:[%s7481_s21 + $0x5e0] ss:$16 sps:$4 sm:$0xff]  }
  0xa7   : > { %4016 = vmatpush2.bf16.msra.mxu0 %v6237_v60  ;;  %v6310_v54 = vld [vmem:[%s7481_s21 + $0x7e4] ss:$16 sps:$4 sm:$0xff]   ;;  %v6308_v56 = vld [vmem:[%s7481_s21 + $0x7e0] ss:$16 sps:$4 sm:$0xff]  }
  0xa8   : > { %4057 = vmatpush2.bf16.msra.mxu1 %v6238_v62  ;;  %4017 = vmatprep.subr.bf16.mxu0 %v6239_v63  ;;  %v6313_v57 = vld [vmem:[%s7481_s21 + $0x5c4] ss:$16 sps:$4 sm:$0xff]   ;;  %v6311_v59 = vld [vmem:[%s7481_s21 + $0x5c0] ss:$16 sps:$4 sm:$0xff]  }
  0xa9   : > { %4058 = vmatprep.subr.bf16.mxu1 %v6241_v0  ;;  %v6316_v58 = vld [vmem:[%s7481_s21 + $0x7c4] ss:$16 sps:$4 sm:$0xff]   ;;  %v6314_v60 = vld [vmem:[%s7481_s21 + $0x7c0] ss:$16 sps:$4 sm:$0xff]  }
  0xaa   : > { %v6319_v62 = vld [vmem:[%s7481_s21 + $0x5a4] ss:$16 sps:$4 sm:$0xff]   ;;  %v6317_v0 = vld [vmem:[%s7481_s21 + $0x5a0] ss:$16 sps:$4 sm:$0xff]  }
  0xab   : > { %4018 = vmatpush2.bf16.msra.mxu0 %v6243_v3  ;;  %v6322_v63 = vld [vmem:[%s7481_s21 + $0x7a4] ss:$16 sps:$4 sm:$0xff]   ;;  %v6320_v2 = vld [vmem:[%s7481_s21 + $0x7a0] ss:$16 sps:$4 sm:$0xff]  }
  0xac   : > { %4059 = vmatpush2.bf16.msra.mxu1 %v6244_v4  ;;  %4019 = vmatprep.subr.bf16.mxu0 %v6245_v5  ;;  %v6325_v3 = vld [vmem:[%s7481_s21 + $0x584] ss:$16 sps:$4 sm:$0xff]   ;;  %v6323_v5 = vld [vmem:[%s7481_s21 + $0x580] ss:$16 sps:$4 sm:$0xff]  }
  0xad   : > { %4060 = vmatprep.subr.bf16.mxu1 %v6247_v6  ;;  %v6328_v4 = vld [vmem:[%s7481_s21 + $0x784] ss:$16 sps:$4 sm:$0xff]   ;;  %v6326_v6 = vld [vmem:[%s7481_s21 + $0x780] ss:$16 sps:$4 sm:$0xff]  }
  0xae   : > { %v6337_v12 = vld [vmem:[%s7481_s21 + $0x544] ss:$16 sps:$4 sm:$0xff]  }
  0xaf   : > { %4020 = vmatpush2.bf16.msra.mxu0 %v6249_v8  ;;  %v6331_v8 = vld [vmem:[%s7481_s21 + $0x564] ss:$16 sps:$4 sm:$0xff]  }
  0xb0   : > { %4061 = vmatpush2.bf16.msra.mxu1 %v6250_v9  ;;  %4021 = vmatprep.subr.bf16.mxu0 %v6251_v10  ;;  %v6334_v9 = vld [vmem:[%s7481_s21 + $0x764] ss:$16 sps:$4 sm:$0xff]   ;;  %v6329_v10 = vld [vmem:[%s7481_s21 + $0x560] ss:$16 sps:$4 sm:$0xff]  }
  0xb1   : > { %4062 = vmatprep.subr.bf16.mxu1 %v6253_v11  ;;  %v6332_v11 = vld [vmem:[%s7481_s21 + $0x760] ss:$16 sps:$4 sm:$0xff]  }
  0xb3   : > { %4022 = vmatpush2.bf16.msra.mxu0 %v6255_v13  ;;  %v6340_v13 = vld [vmem:[%s7481_s21 + $0x744] ss:$16 sps:$4 sm:$0xff]  }
  0xb4   : > { %4063 = vmatpush2.bf16.msra.mxu1 %v6256_v15  ;;  %4073 = vmatprep.subr.bf16.mxu0 %v6259_v16  ;;  %v6335_v15 = vld [vmem:[%s7481_s21 + $0x540] ss:$16 sps:$4 sm:$0xff]  }
  0xb5   : > { %4114 = vmatprep.subr.bf16.mxu1 %v6262_v17  ;;  %v6338_v16 = vld [vmem:[%s7481_s21 + $0x740] ss:$16 sps:$4 sm:$0xff]   ;;  %v6343_v17 = vld [vmem:[%s7481_s21 + $0x524] ss:$16 sps:$4 sm:$0xff]  }
  0xb6   : > { %4024 = vmatmul.mubr.bf16.vlgmr.msra.gmra.mxu0 %v7581_v14 }
  0xb7   : > { %4065 = vmatmul.mubr.bf16.vlgmr.msra.gmra.mxu1 %v7591_v19  ;;  %4074 = vmatpush1.bf16.msra.mxu0 %v6257_v20  ;;  %v6346_v20 = vld [vmem:[%s7481_s21 + $0x724] ss:$16 sps:$4 sm:$0xff]  }
  0xb8   : > { %4115 = vmatpush1.bf16.msra.mxu1 %v6260_v21  ;;  %4075 = vmatprep.subr.bf16.mxu0 %v6265_v22  ;;  %v6341_v21 = vld [vmem:[%s7481_s21 + $0x520] ss:$16 sps:$4 sm:$0xff]  }
  0xb9   : > { %4116 = vmatprep.subr.bf16.mxu1 %v6268_v23  ;;  %4105 = vmatprep.mubr.bf16.mxu0 %v7587_v18  ;;  %v6344_v22 = vld [vmem:[%s7481_s21 + $0x720] ss:$16 sps:$4 sm:$0xff]   ;;  %v6349_v23 = vld [vmem:[%s7481_s21 + $0x504] ss:$16 sps:$4 sm:$0xff]  }
  0xba   : > { %4146 = vmatprep.mubr.bf16.mxu1 %v7599_v24 }
  0xbb   : > { %4076 = vmatpush1.bf16.msra.mxu0 %v6263_v25  ;;  %v6352_v25 = vld [vmem:[%s7481_s21 + $0x704] ss:$16 sps:$4 sm:$0xff]  }
  0xbc   : > { %4117 = vmatpush1.bf16.msra.mxu1 %v6266_v26  ;;  %4077 = vmatprep.subr.bf16.mxu0 %v6271_v27  ;;  %v6347_v26 = vld [vmem:[%s7481_s21 + $0x500] ss:$16 sps:$4 sm:$0xff]   ;;  %v7664_v27 = vrot.slane %v7571_v7, %v7543_v50 }
  0xbd   : > { %4118 = vmatprep.subr.bf16.mxu1 %v6274_v28  ;;  %v6350_v28 = vld [vmem:[%s7481_s21 + $0x700] ss:$16 sps:$4 sm:$0xff]  }
  0xbe   : > { %v6357_v7 = vld [vmem:[%s7481_s21 + $0xae0] ss:$16 sps:$4 sm:$0xff]  }
  0xbf   : > { %4078 = vmatpush1.bf16.msra.mxu0 %v6269_v29  ;;  %v6356_v29 = vld [vmem:[%s7481_s21 + $0x8e4] ss:$16 sps:$4 sm:$0xff]  }
  0xc0   : > { %4119 = vmatpush1.bf16.msra.mxu1 %v6272_v30  ;;  %4079 = vmatprep.subr.bf16.mxu0 %v6277_v31  ;;  %v6359_v30 = vld [vmem:[%s7481_s21 + $0xae4] ss:$16 sps:$4 sm:$0xff]   ;;  %v7671_v31 = vcombine.high %v7664_v27, %v7664_v27 }
  0xc1   : > { %4120 = vmatprep.subr.bf16.mxu1 %v6280_v32  ;;  %v6354_v32 = vld [vmem:[%s7481_s21 + $0x8e0] ss:$16 sps:$4 sm:$0xff]  }
  0xc3   : > { %4080 = vmatpush1.bf16.msra.mxu0 %v6275_v33  ;;  %v7676_v33 = vld [vmem:[%s7474_s18 + $0x8] sm:$0xff] }
  0xc4   : > { %4121 = vmatpush1.bf16.msra.mxu1 %v6278_v34  ;;  %4081 = vmatprep.subr.bf16.mxu0 %v6283_v35  ;;  %v6362_v34 = vld [vmem:[%s7481_s21 + $0x8c4] ss:$16 sps:$4 sm:$0xff]  }
  0xc5   : > { %4122 = vmatprep.subr.bf16.mxu1 %v6286_v36  ;;  %v6365_v35 = vld [vmem:[%s7481_s21 + $0xac4] ss:$16 sps:$4 sm:$0xff]   ;;  %v7682_v36 = vrot.slane %v7676_v33, %v7543_v50 }
  0xc7   : > { %4082 = vmatpush1.bf16.msra.mxu0 %v6281_v37  ;;  %v1037_v37 = vcombine.high %v7682_v36, %v7682_v36 }
  0xc8   : > { %4123 = vmatpush1.bf16.msra.mxu1 %v6284_v38  ;;  %4083 = vmatprep.subr.bf16.mxu0 %v6289_v39  ;;  %v6360_v38 = vld [vmem:[%s7481_s21 + $0x8c0] ss:$16 sps:$4 sm:$0xff]  }
  0xc9   : > { %4124 = vmatprep.subr.bf16.mxu1 %v6292_v40  ;;  %v6363_v39 = vld [vmem:[%s7481_s21 + $0xac0] ss:$16 sps:$4 sm:$0xff]   ;;  %v6368_v40 = vld [vmem:[%s7481_s21 + $0x8a4] ss:$16 sps:$4 sm:$0xff]  }
  0xcb   : > { %4084 = vmatpush1.bf16.msra.mxu0 %v6287_v41  ;;  %v6371_v41 = vld [vmem:[%s7481_s21 + $0xaa4] ss:$16 sps:$4 sm:$0xff]  }
  0xcc   : > { %4125 = vmatpush1.bf16.msra.mxu1 %v6290_v42  ;;  %4085 = vmatprep.subr.bf16.mxu0 %v6295_v43  ;;  %v7693_v42 = vrot.slane %v1037_v37, %v7543_v50  ;;  %v6432_v37 = vld [vmem:[%s7481_s21 + $0x940] ss:$16 sps:$4 sm:$0xff]  }
  0xcd   : > { %4126 = vmatprep.subr.bf16.mxu1 %v6298_v45  ;;  %v6366_v45 = vld [vmem:[%s7481_s21 + $0x8a0] ss:$16 sps:$4 sm:$0xff]  }
  0xce   : > { %v7698_v43 = vcombine.high %v7693_v42, %v7693_v42 }
  0xcf   : > { %4086 = vmatpush1.bf16.msra.mxu0 %v6293_v46  ;;  %v6369_v46 = vld [vmem:[%s7481_s21 + $0xaa0] ss:$16 sps:$4 sm:$0xff]  }
  0xd0   : > { %4127 = vmatpush1.bf16.msra.mxu1 %v6296_v47  ;;  %4087 = vmatprep.subr.bf16.mxu0 %v6301_v48  ;;  %v6374_v47 = vld [vmem:[%s7481_s21 + $0x884] ss:$16 sps:$4 sm:$0xff]  }
  0xd1   : > { %4128 = vmatprep.subr.bf16.mxu1 %v6304_v49  ;;  %v6377_v48 = vld [vmem:[%s7481_s21 + $0xa84] ss:$16 sps:$4 sm:$0xff]   ;;  %v6372_v49 = vld [vmem:[%s7481_s21 + $0x880] ss:$16 sps:$4 sm:$0xff]  }
  0xd3   : > { %4088 = vmatpush1.bf16.msra.mxu0 %v6299_v51  ;;  %v6375_v51 = vld [vmem:[%s7481_s21 + $0xa80] ss:$16 sps:$4 sm:$0xff]  }
  0xd4   : > { %4129 = vmatpush1.bf16.msra.mxu1 %v6302_v52  ;;  %4089 = vmatprep.subr.bf16.mxu0 %v6307_v53  ;;  %v6380_v52 = vld [vmem:[%s7481_s21 + $0x864] ss:$16 sps:$4 sm:$0xff]  }
  0xd5   : > { %4130 = vmatprep.subr.bf16.mxu1 %v6310_v54  ;;  %v6383_v53 = vld [vmem:[%s7481_s21 + $0xa64] ss:$16 sps:$4 sm:$0xff]   ;;  %v6378_v54 = vld [vmem:[%s7481_s21 + $0x860] ss:$16 sps:$4 sm:$0xff]  }
  0xd7   : > { %4090 = vmatpush2.bf16.msra.mxu0 %v6305_v55  ;;  %v6381_v55 = vld [vmem:[%s7481_s21 + $0xa60] ss:$16 sps:$4 sm:$0xff]  }
  0xd8   : > { %4131 = vmatpush2.bf16.msra.mxu1 %v6308_v56  ;;  %4091 = vmatprep.subr.bf16.mxu0 %v6313_v57  ;;  %v6386_v56 = vld [vmem:[%s7481_s21 + $0x844] ss:$16 sps:$4 sm:$0xff]  }
  0xd9   : > { %4132 = vmatprep.subr.bf16.mxu1 %v6316_v58  ;;  %v6389_v57 = vld [vmem:[%s7481_s21 + $0xa44] ss:$16 sps:$4 sm:$0xff]   ;;  %v6384_v58 = vld [vmem:[%s7481_s21 + $0x840] ss:$16 sps:$4 sm:$0xff]  }
  0xdb   : > { %4092 = vmatpush2.bf16.msra.mxu0 %v6311_v59  ;;  %v6387_v59 = vld [vmem:[%s7481_s21 + $0xa40] ss:$16 sps:$4 sm:$0xff]  }
  0xdc   : > { %4133 = vmatpush2.bf16.msra.mxu1 %v6314_v60  ;;  %4093 = vmatprep.subr.bf16.mxu0 %v6319_v62  ;;  %v6392_v60 = vld [vmem:[%s7481_s21 + $0x824] ss:$16 sps:$4 sm:$0xff]  }
  0xdd   : > { %4134 = vmatprep.subr.bf16.mxu1 %v6322_v63  ;;  %v6395_v62 = vld [vmem:[%s7481_s21 + $0xa24] ss:$16 sps:$4 sm:$0xff]   ;;  %v6390_v63 = vld [vmem:[%s7481_s21 + $0x820] ss:$16 sps:$4 sm:$0xff]  }
  0xdf   : > { %4094 = vmatpush2.bf16.msra.mxu0 %v6317_v0  ;;  %v6393_v0 = vld [vmem:[%s7481_s21 + $0xa20] ss:$16 sps:$4 sm:$0xff]  }
  0xe0   : > { %4135 = vmatpush2.bf16.msra.mxu1 %v6320_v2  ;;  %4095 = vmatprep.subr.bf16.mxu0 %v6325_v3  ;;  %v6398_v2 = vld [vmem:[%s7481_s21 + $0x804] ss:$16 sps:$4 sm:$0xff]  }
  0xe1   : > { %4136 = vmatprep.subr.bf16.mxu1 %v6328_v4  ;;  %v6401_v3 = vld [vmem:[%s7481_s21 + $0xa04] ss:$16 sps:$4 sm:$0xff]   ;;  %v6396_v4 = vld [vmem:[%s7481_s21 + $0x800] ss:$16 sps:$4 sm:$0xff]  }
  0xe3   : > { %4096 = vmatpush2.bf16.msra.mxu0 %v6323_v5  ;;  %v6399_v5 = vld [vmem:[%s7481_s21 + $0xa00] ss:$16 sps:$4 sm:$0xff]  }
  0xe4   : > { %4137 = vmatpush2.bf16.msra.mxu1 %v6326_v6  ;;  %4097 = vmatprep.subr.bf16.mxu0 %v6331_v8  ;;  %v6404_v6 = vld [vmem:[%s7481_s21 + $0x9e4] ss:$16 sps:$4 sm:$0xff]  }
  0xe5   : > { %4138 = vmatprep.subr.bf16.mxu1 %v6334_v9  ;;  %v6407_v8 = vld [vmem:[%s7481_s21 + $0xbe4] ss:$16 sps:$4 sm:$0xff]   ;;  %v6402_v9 = vld [vmem:[%s7481_s21 + $0x9e0] ss:$16 sps:$4 sm:$0xff]  }
  0xe7   : > { %4098 = vmatpush2.bf16.msra.mxu0 %v6329_v10  ;;  %v6405_v10 = vld [vmem:[%s7481_s21 + $0xbe0] ss:$16 sps:$4 sm:$0xff]  }
  0xe8   : > { %4139 = vmatpush2.bf16.msra.mxu1 %v6332_v11  ;;  %4099 = vmatprep.subr.bf16.mxu0 %v6337_v12  ;;  %v6410_v11 = vld [vmem:[%s7481_s21 + $0x9c4] ss:$16 sps:$4 sm:$0xff]  }
  0xe9   : > { %4140 = vmatprep.subr.bf16.mxu1 %v6340_v13  ;;  %v6413_v12 = vld [vmem:[%s7481_s21 + $0xbc4] ss:$16 sps:$4 sm:$0xff]   ;;  %v6408_v13 = vld [vmem:[%s7481_s21 + $0x9c0] ss:$16 sps:$4 sm:$0xff]  }
  0xeb   : > { %4100 = vmatpush2.bf16.msra.mxu0 %v6335_v15  ;;  %v6411_v15 = vld [vmem:[%s7481_s21 + $0xbc0] ss:$16 sps:$4 sm:$0xff]  }
  0xec   : > { %4141 = vmatpush2.bf16.msra.mxu1 %v6338_v16  ;;  %4101 = vmatprep.subr.bf16.mxu0 %v6343_v17  ;;  %v6416_v16 = vld [vmem:[%s7481_s21 + $0x9a4] ss:$16 sps:$4 sm:$0xff]  }
  0xed   : > { %4142 = vmatprep.subr.bf16.mxu1 %v6346_v20  ;;  %v6419_v17 = vld [vmem:[%s7481_s21 + $0xba4] ss:$16 sps:$4 sm:$0xff]   ;;  %v6414_v20 = vld [vmem:[%s7481_s21 + $0x9a0] ss:$16 sps:$4 sm:$0xff]  }
  0xef   : > { %4102 = vmatpush2.bf16.msra.mxu0 %v6341_v21  ;;  %v6417_v21 = vld [vmem:[%s7481_s21 + $0xba0] ss:$16 sps:$4 sm:$0xff]  }
  0xf0   : > { %4143 = vmatpush2.bf16.msra.mxu1 %v6344_v22  ;;  %4103 = vmatprep.subr.bf16.mxu0 %v6349_v23  ;;  %v6422_v22 = vld [vmem:[%s7481_s21 + $0x984] ss:$16 sps:$4 sm:$0xff]  }
  0xf1   : > { %4144 = vmatprep.subr.bf16.mxu1 %v6352_v25  ;;  %v6425_v23 = vld [vmem:[%s7481_s21 + $0xb84] ss:$16 sps:$4 sm:$0xff]   ;;  %v6420_v25 = vld [vmem:[%s7481_s21 + $0x980] ss:$16 sps:$4 sm:$0xff]  }
  0xf3   : > { %4104 = vmatpush2.bf16.msra.mxu0 %v6347_v26  ;;  %v6423_v26 = vld [vmem:[%s7481_s21 + $0xb80] ss:$16 sps:$4 sm:$0xff]  }
  0xf4   : > { %4145 = vmatpush2.bf16.msra.mxu1 %v6350_v28  ;;  %4155 = vmatprep.subr.bf16.mxu0 %v6356_v29  ;;  %v6428_v28 = vld [vmem:[%s7481_s21 + $0x964] ss:$16 sps:$4 sm:$0xff]  }
  0xf5   : > { %4196 = vmatprep.subr.bf16.mxu1 %v6359_v30  ;;  %v6431_v29 = vld [vmem:[%s7481_s21 + $0xb64] ss:$16 sps:$4 sm:$0xff]   ;;  %v6426_v30 = vld [vmem:[%s7481_s21 + $0x960] ss:$16 sps:$4 sm:$0xff]  }
  0xf6   : > { %4106 = vmatmul.mubr.bf16.vlgmr.msra.gmra.mxu0 %v7664_v27 }
  0xf7   : > { %4147 = vmatmul.mubr.bf16.vlgmr.msra.gmra.mxu1 %v7671_v31  ;;  %4156 = vmatpush1.bf16.msra.mxu0 %v6354_v32  ;;  %v6429_v32 = vld [vmem:[%s7481_s21 + $0xb60] ss:$16 sps:$4 sm:$0xff]  }
  0xf8   : > { %4197 = vmatpush1.bf16.msra.mxu1 %v6357_v7  ;;  %4157 = vmatprep.subr.bf16.mxu0 %v6362_v34  ;;  %v6434_v7 = vld [vmem:[%s7481_s21 + $0x944] ss:$16 sps:$4 sm:$0xff]  }
  0xf9   : > { %4198 = vmatprep.subr.bf16.mxu1 %v6365_v35  ;;  %4187 = vmatprep.mubr.bf16.mxu0 %v7693_v42  ;;  %v6437_v34 = vld [vmem:[%s7481_s21 + $0xb44] ss:$16 sps:$4 sm:$0xff]   ;;  %v1022_v35 = vcombine.high %v7676_v33, %v7676_v33  ;;  %v6438_v33 = vld [vmem:[%s7481_s21 + $0x920] ss:$16 sps:$4 sm:$0xff]  }
  0xfa   : > { %4228 = vmatprep.mubr.bf16.mxu1 %v7698_v43 }
  0xfb   : > { %4158 = vmatpush1.bf16.msra.mxu0 %v6360_v38  ;;  %v6435_v38 = vld [vmem:[%s7481_s21 + $0xb40] ss:$16 sps:$4 sm:$0xff]  }
  0xfc   : > { %4199 = vmatpush1.bf16.msra.mxu1 %v6363_v39  ;;  %4159 = vmatprep.subr.bf16.mxu0 %v6368_v40  ;;  %v6440_v39 = vld [vmem:[%s7481_s21 + $0x924] ss:$16 sps:$4 sm:$0xff]  }
  0xfd   : > { %4200 = vmatprep.subr.bf16.mxu1 %v6371_v41  ;;  %v6443_v40 = vld [vmem:[%s7481_s21 + $0xb24] ss:$16 sps:$4 sm:$0xff]   ;;  %v7752_v41 = vrot.slane %v1022_v35, %v7543_v50  ;;  %v6501_v35 = vld [vmem:[%s7481_s21 + $0xfe0] ss:$16 sps:$4 sm:$0xff]  }
  0xff   : > { %4160 = vmatpush1.bf16.msra.mxu0 %v6366_v45  ;;  %v6441_v45 = vld [vmem:[%s7481_s21 + $0xb20] ss:$16 sps:$4 sm:$0xff]  }
 0x100   : > { %4201 = vmatpush1.bf16.msra.mxu1 %v6369_v46  ;;  %4161 = vmatprep.subr.bf16.mxu0 %v6374_v47  ;;  %v6446_v46 = vld [vmem:[%s7481_s21 + $0x904] ss:$16 sps:$4 sm:$0xff]  }
 0x101   : > { %4202 = vmatprep.subr.bf16.mxu1 %v6377_v48  ;;  %v6449_v47 = vld [vmem:[%s7481_s21 + $0xb04] ss:$16 sps:$4 sm:$0xff]   ;;  %v1038_v48 = vcombine.high %v7752_v41, %v7752_v41 }
 0x103   : > { %4162 = vmatpush1.bf16.msra.mxu0 %v6372_v49  ;;  %v7762_v49 = vrot.slane %v7682_v36, %v7543_v50  ;;  %v6450_v36 = vld [vmem:[%s7481_s21 + $0xce0] ss:$16 sps:$4 sm:$0xff]  }
 0x104   : > { %4203 = vmatpush1.bf16.msra.mxu1 %v6375_v51  ;;  %4163 = vmatprep.subr.bf16.mxu0 %v6380_v52  ;;  %v6444_v51 = vld [vmem:[%s7481_s21 + $0x900] ss:$16 sps:$4 sm:$0xff]  }
 0x105   : > { %4204 = vmatprep.subr.bf16.mxu1 %v6383_v53  ;;  %v6447_v52 = vld [vmem:[%s7481_s21 + $0xb00] ss:$16 sps:$4 sm:$0xff]   ;;  %v6452_v53 = vld [vmem:[%s7481_s21 + $0xce4] ss:$16 sps:$4 sm:$0xff]  }
 0x107   : > { %4164 = vmatpush1.bf16.msra.mxu0 %v6378_v54  ;;  %v6455_v54 = vld [vmem:[%s7481_s21 + $0xee4] ss:$16 sps:$4 sm:$0xff]  }
 0x108   : > { %4205 = vmatpush1.bf16.msra.mxu1 %v6381_v55  ;;  %4165 = vmatprep.subr.bf16.mxu0 %v6386_v56  ;;  %v7769_v55 = vrot.slane %v1038_v48, %v7543_v50  ;;  %v7773_v56 = vcombine.high %v7762_v49, %v7762_v49  ;;  %v6518_v48 = vld [vmem:[%s7481_s21 + $0xd84] ss:$16 sps:$4 sm:$0xff]  }
 0x109   : > { %4206 = vmatprep.subr.bf16.mxu1 %v6389_v57  ;;  %v6453_v57 = vld [vmem:[%s7481_s21 + $0xee0] ss:$16 sps:$4 sm:$0xff]  }
 0x10b   : > { %4166 = vmatpush1.bf16.msra.mxu0 %v6384_v58  ;;  %v6458_v58 = vld [vmem:[%s7481_s21 + $0xcc4] ss:$16 sps:$4 sm:$0xff]  }
 0x10c   : > { %4207 = vmatpush1.bf16.msra.mxu1 %v6387_v59  ;;  %4167 = vmatprep.subr.bf16.mxu0 %v6392_v60  ;;  %v6461_v59 = vld [vmem:[%s7481_s21 + $0xec4] ss:$16 sps:$4 sm:$0xff]   ;;  %v7781_v60 = vcombine.high %v7769_v55, %v7769_v55 }
 0x10d   : > { %4208 = vmatprep.subr.bf16.mxu1 %v6395_v62  ;;  %v6456_v62 = vld [vmem:[%s7481_s21 + $0xcc0] ss:$16 sps:$4 sm:$0xff]  }
 0x10f   : > { %4168 = vmatpush1.bf16.msra.mxu0 %v6390_v63  ;;  %v6459_v63 = vld [vmem:[%s7481_s21 + $0xec0] ss:$16 sps:$4 sm:$0xff]  }
 0x110   : > { %4209 = vmatpush1.bf16.msra.mxu1 %v6393_v0  ;;  %4169 = vmatprep.subr.bf16.mxu0 %v6398_v2  ;;  %v6464_v0 = vld [vmem:[%s7481_s21 + $0xca4] ss:$16 sps:$4 sm:$0xff]  }
 0x111   : > { %4210 = vmatprep.subr.bf16.mxu1 %v6401_v3  ;;  %v6467_v2 = vld [vmem:[%s7481_s21 + $0xea4] ss:$16 sps:$4 sm:$0xff]   ;;  %v6462_v3 = vld [vmem:[%s7481_s21 + $0xca0] ss:$16 sps:$4 sm:$0xff]  }
 0x113   : > { %4170 = vmatpush1.bf16.msra.mxu0 %v6396_v4  ;;  %v6465_v4 = vld [vmem:[%s7481_s21 + $0xea0] ss:$16 sps:$4 sm:$0xff]  }
 0x114   : > { %4211 = vmatpush1.bf16.msra.mxu1 %v6399_v5  ;;  %4171 = vmatprep.subr.bf16.mxu0 %v6404_v6  ;;  %v6470_v5 = vld [vmem:[%s7481_s21 + $0xc84] ss:$16 sps:$4 sm:$0xff]  }
 0x115   : > { %4212 = vmatprep.subr.bf16.mxu1 %v6407_v8  ;;  %v6473_v6 = vld [vmem:[%s7481_s21 + $0xe84] ss:$16 sps:$4 sm:$0xff]   ;;  %v6468_v8 = vld [vmem:[%s7481_s21 + $0xc80] ss:$16 sps:$4 sm:$0xff]  }
 0x117   : > { %4172 = vmatpush2.bf16.msra.mxu0 %v6402_v9  ;;  %v6471_v9 = vld [vmem:[%s7481_s21 + $0xe80] ss:$16 sps:$4 sm:$0xff]  }
 0x118   : > { %4213 = vmatpush2.bf16.msra.mxu1 %v6405_v10  ;;  %4173 = vmatprep.subr.bf16.mxu0 %v6410_v11  ;;  %v6476_v10 = vld [vmem:[%s7481_s21 + $0xc64] ss:$16 sps:$4 sm:$0xff]  }
 0x119   : > { %4214 = vmatprep.subr.bf16.mxu1 %v6413_v12  ;;  %v6479_v11 = vld [vmem:[%s7481_s21 + $0xe64] ss:$16 sps:$4 sm:$0xff]   ;;  %v6474_v12 = vld [vmem:[%s7481_s21 + $0xc60] ss:$16 sps:$4 sm:$0xff]  }
 0x11b   : > { %4174 = vmatpush2.bf16.msra.mxu0 %v6408_v13  ;;  %v6477_v13 = vld [vmem:[%s7481_s21 + $0xe60] ss:$16 sps:$4 sm:$0xff]  }
 0x11c   : > { %4215 = vmatpush2.bf16.msra.mxu1 %v6411_v15  ;;  %4175 = vmatprep.subr.bf16.mxu0 %v6416_v16  ;;  %v6482_v15 = vld [vmem:[%s7481_s21 + $0xc44] ss:$16 sps:$4 sm:$0xff]  }
 0x11d   : > { %4216 = vmatprep.subr.bf16.mxu1 %v6419_v17  ;;  %v6485_v16 = vld [vmem:[%s7481_s21 + $0xe44] ss:$16 sps:$4 sm:$0xff]   ;;  %v6480_v17 = vld [vmem:[%s7481_s21 + $0xc40] ss:$16 sps:$4 sm:$0xff]  }
 0x11f   : > { %4176 = vmatpush2.bf16.msra.mxu0 %v6414_v20  ;;  %v6483_v20 = vld [vmem:[%s7481_s21 + $0xe40] ss:$16 sps:$4 sm:$0xff]  }
 0x120   : > { %4217 = vmatpush2.bf16.msra.mxu1 %v6417_v21  ;;  %4177 = vmatprep.subr.bf16.mxu0 %v6422_v22  ;;  %v6488_v21 = vld [vmem:[%s7481_s21 + $0xc24] ss:$16 sps:$4 sm:$0xff]  }
 0x121   : > { %4218 = vmatprep.subr.bf16.mxu1 %v6425_v23  ;;  %v6491_v22 = vld [vmem:[%s7481_s21 + $0xe24] ss:$16 sps:$4 sm:$0xff]   ;;  %v6486_v23 = vld [vmem:[%s7481_s21 + $0xc20] ss:$16 sps:$4 sm:$0xff]  }
 0x123   : > { %4178 = vmatpush2.bf16.msra.mxu0 %v6420_v25  ;;  %v6489_v25 = vld [vmem:[%s7481_s21 + $0xe20] ss:$16 sps:$4 sm:$0xff]  }
 0x124   : > { %4219 = vmatpush2.bf16.msra.mxu1 %v6423_v26  ;;  %4179 = vmatprep.subr.bf16.mxu0 %v6428_v28  ;;  %v6494_v26 = vld [vmem:[%s7481_s21 + $0xc04] ss:$16 sps:$4 sm:$0xff]  }
 0x125   : > { %4220 = vmatprep.subr.bf16.mxu1 %v6431_v29  ;;  %v6497_v28 = vld [vmem:[%s7481_s21 + $0xe04] ss:$16 sps:$4 sm:$0xff]   ;;  %v6492_v29 = vld [vmem:[%s7481_s21 + $0xc00] ss:$16 sps:$4 sm:$0xff]  }
 0x127   : > { %4180 = vmatpush2.bf16.msra.mxu0 %v6426_v30  ;;  %v6495_v30 = vld [vmem:[%s7481_s21 + $0xe00] ss:$16 sps:$4 sm:$0xff]  }
 0x128   : > { %4221 = vmatpush2.bf16.msra.mxu1 %v6429_v32  ;;  %4181 = vmatprep.subr.bf16.mxu0 %v6434_v7  ;;  %v6500_v32 = vld [vmem:[%s7481_s21 + $0xde4] ss:$16 sps:$4 sm:$0xff]  }
 0x129   : > { %4222 = vmatprep.subr.bf16.mxu1 %v6437_v34  ;;  %v6503_v7 = vld [vmem:[%s7481_s21 + $0xfe4] ss:$16 sps:$4 sm:$0xff]   ;;  %v6498_v34 = vld [vmem:[%s7481_s21 + $0xde0] ss:$16 sps:$4 sm:$0xff]  }
 0x12b   : > { %4182 = vmatpush2.bf16.msra.mxu0 %v6432_v37  ;;  %v6506_v37 = vld [vmem:[%s7481_s21 + $0xdc4] ss:$16 sps:$4 sm:$0xff]  }
 0x12c   : > { %4223 = vmatpush2.bf16.msra.mxu1 %v6435_v38  ;;  %4183 = vmatprep.subr.bf16.mxu0 %v6440_v39  ;;  %v6509_v38 = vld [vmem:[%s7481_s21 + $0xfc4] ss:$16 sps:$4 sm:$0xff]   ;;  %v6504_v39 = vld [vmem:[%s7481_s21 + $0xdc0] ss:$16 sps:$4 sm:$0xff]  }
 0x12d   : > { %4224 = vmatprep.subr.bf16.mxu1 %v6443_v40  ;;  %v6507_v40 = vld [vmem:[%s7481_s21 + $0xfc0] ss:$16 sps:$4 sm:$0xff]  }
 0x12f   : > { %4184 = vmatpush2.bf16.msra.mxu0 %v6438_v33  ;;  %v6512_v33 = vld [vmem:[%s7481_s21 + $0xda4] ss:$16 sps:$4 sm:$0xff]  }
 0x130   : > { %4225 = vmatpush2.bf16.msra.mxu1 %v6441_v45  ;;  %4185 = vmatprep.subr.bf16.mxu0 %v6446_v46  ;;  %v6515_v45 = vld [vmem:[%s7481_s21 + $0xfa4] ss:$16 sps:$4 sm:$0xff]   ;;  %v6510_v46 = vld [vmem:[%s7481_s21 + $0xda0] ss:$16 sps:$4 sm:$0xff]  }
 0x131   : > { %4226 = vmatprep.subr.bf16.mxu1 %v6449_v47  ;;  %v6513_v47 = vld [vmem:[%s7481_s21 + $0xfa0] ss:$16 sps:$4 sm:$0xff]  }
 0x133   : > { %4186 = vmatpush2.bf16.msra.mxu0 %v6444_v51  ;;  %v6521_v51 = vld [vmem:[%s7481_s21 + $0xf84] ss:$16 sps:$4 sm:$0xff]  }
 0x134   : > { %4227 = vmatpush2.bf16.msra.mxu1 %v6447_v52  ;;  %4237 = vmatprep.subr.bf16.mxu0 %v6452_v53  ;;  %v6516_v52 = vld [vmem:[%s7481_s21 + $0xd80] ss:$16 sps:$4 sm:$0xff]  }
 0x135   : > { %4278 = vmatprep.subr.bf16.mxu1 %v6455_v54  ;;  %v6519_v53 = vld [vmem:[%s7481_s21 + $0xf80] ss:$16 sps:$4 sm:$0xff]   ;;  %v6524_v54 = vld [vmem:[%s7481_s21 + $0xd64] ss:$16 sps:$4 sm:$0xff]  }
 0x136   : > { %4188 = vmatmul.mubr.bf16.vlgmr.msra.gmra.mxu0 %v7762_v49 }
 0x137   : > { %4229 = vmatmul.mubr.bf16.vlgmr.msra.gmra.mxu1 %v7773_v56  ;;  %4238 = vmatpush1.bf16.msra.mxu0 %v6450_v36  ;;  %v6527_v36 = vld [vmem:[%s7481_s21 + $0xf64] ss:$16 sps:$4 sm:$0xff]  }
 0x138   : > { %4279 = vmatpush1.bf16.msra.mxu1 %v6453_v57  ;;  %4239 = vmatprep.subr.bf16.mxu0 %v6458_v58  ;;  %v6522_v57 = vld [vmem:[%s7481_s21 + $0xd60] ss:$16 sps:$4 sm:$0xff]  }
 0x139   : > { %4280 = vmatprep.subr.bf16.mxu1 %v6461_v59  ;;  %4269 = vmatprep.mubr.bf16.mxu0 %v7769_v55  ;;  %v6525_v58 = vld [vmem:[%s7481_s21 + $0xf60] ss:$16 sps:$4 sm:$0xff]   ;;  %v6530_v59 = vld [vmem:[%s7481_s21 + $0xd44] ss:$16 sps:$4 sm:$0xff]  }
 0x13a   : > { %4310 = vmatprep.mubr.bf16.mxu1 %v7781_v60 }
 0x13b   : > { %4240 = vmatpush1.bf16.msra.mxu0 %v6456_v62  ;;  %v6533_v62 = vld [vmem:[%s7481_s21 + $0xf44] ss:$16 sps:$4 sm:$0xff]  }
 0x13c   : > { %4281 = vmatpush1.bf16.msra.mxu1 %v6459_v63  ;;  %4241 = vmatprep.subr.bf16.mxu0 %v6464_v0  ;;  %v6528_v63 = vld [vmem:[%s7481_s21 + $0xd40] ss:$16 sps:$4 sm:$0xff]  }
 0x13d   : > { %4282 = vmatprep.subr.bf16.mxu1 %v6467_v2  ;;  %v6531_v0 = vld [vmem:[%s7481_s21 + $0xf40] ss:$16 sps:$4 sm:$0xff]   ;;  %v6536_v2 = vld [vmem:[%s7481_s21 + $0xd24] ss:$16 sps:$4 sm:$0xff]  }
 0x13f   : > { %4242 = vmatpush1.bf16.msra.mxu0 %v6462_v3  ;;  %v6539_v3 = vld [vmem:[%s7481_s21 + $0xf24] ss:$16 sps:$4 sm:$0xff]  }
 0x140   : > { %4283 = vmatpush1.bf16.msra.mxu1 %v6465_v4  ;;  %4243 = vmatprep.subr.bf16.mxu0 %v6470_v5  ;;  %v6534_v4 = vld [vmem:[%s7481_s21 + $0xd20] ss:$16 sps:$4 sm:$0xff]  }
 0x141   : > { %4284 = vmatprep.subr.bf16.mxu1 %v6473_v6  ;;  %v6537_v5 = vld [vmem:[%s7481_s21 + $0xf20] ss:$16 sps:$4 sm:$0xff]   ;;  %v6542_v6 = vld [vmem:[%s7481_s21 + $0xd04] ss:$16 sps:$4 sm:$0xff]  }
 0x143   : > { %4244 = vmatpush1.bf16.msra.mxu0 %v6468_v8  ;;  %v6545_v8 = vld [vmem:[%s7481_s21 + $0xf04] ss:$16 sps:$4 sm:$0xff]  }
 0x144   : > { %4285 = vmatpush1.bf16.msra.mxu1 %v6471_v9  ;;  %4245 = vmatprep.subr.bf16.mxu0 %v6476_v10  ;;  %v6540_v9 = vld [vmem:[%s7481_s21 + $0xd00] ss:$16 sps:$4 sm:$0xff]   ;;  %v7846_v10 = vrot.slane %v7752_v41, %v7543_v50 }
 0x145   : > { %4286 = vmatprep.subr.bf16.mxu1 %v6479_v11  ;;  %v7849_v11 = vld.sshfl [vmem:[%s7474_s18 + $0x10] sm:$0x11 pattern:$0x75316420]  ;;  %v6547_v41 = vld [vmem:[%s7481_s21 + $0x10e0] ss:$16 sps:$4 sm:$0xff]  }
 0x147   : > { %4246 = vmatpush1.bf16.msra.mxu0 %v6474_v12  ;;  %v6543_v12 = vld [vmem:[%s7481_s21 + $0xf00] ss:$16 sps:$4 sm:$0xff]  }
 0x148   : > { %4287 = vmatpush1.bf16.msra.mxu1 %v6477_v13  ;;  %4247 = vmatprep.subr.bf16.mxu0 %v6482_v15  ;;  %v6549_v13 = vld [vmem:[%s7481_s21 + $0x10e4] ss:$16 sps:$4 sm:$0xff]   ;;  %v6552_v15 = vld [vmem:[%s7481_s21 + $0xec] ss:$16 sps:$4 sm:$0xff]  }
 0x149   : > { %4288 = vmatprep.subr.bf16.mxu1 %v6485_v16  ;;  %v1078_v16 = vcombine.high %v7849_v11, %v7849_v11 }
 0x14b   : > { %4248 = vmatpush1.bf16.msra.mxu0 %v6480_v17  ;;  %v7858_v17 = vcombine.high %v7846_v10, %v7846_v10 }
 0x14c   : > { %4289 = vmatpush1.bf16.msra.mxu1 %v6483_v20  ;;  %4249 = vmatprep.subr.bf16.mxu0 %v6488_v21  ;;  %v6550_v20 = vld [vmem:[%s7481_s21 + $0xe8] ss:$16 sps:$4 sm:$0xff]   ;;  %v6555_v21 = vld [vmem:[%s7481_s21 + $0x10c4] ss:$16 sps:$4 sm:$0xff]  }
 0x14d   : > { %4290 = vmatprep.subr.bf16.mxu1 %v6491_v22  ;;  %v6558_v22 = vld [vmem:[%s7481_s21 + $0xcc] ss:$16 sps:$4 sm:$0xff]  }
 0x14f   : > { %4250 = vmatpush1.bf16.msra.mxu0 %v6486_v23  ;;  %v7865_v23 = vrot.slane %v1078_v16, %v7543_v50  ;;  %v6603_v16 = vld [vmem:[%s7481_s21 + $0x11c4] ss:$16 sps:$4 sm:$0xff]  }
 0x150   : > { %4291 = vmatpush1.bf16.msra.mxu1 %v6489_v25  ;;  %4251 = vmatprep.subr.bf16.mxu0 %v6494_v26 }
 0x151   : > { %4292 = vmatprep.subr.bf16.mxu1 %v6497_v28  ;;  %v6553_v28 = vld [vmem:[%s7481_s21 + $0x10c0] ss:$16 sps:$4 sm:$0xff]  }
 0x153   : > { %4252 = vmatpush1.bf16.msra.mxu0 %v6492_v29  ;;  %v6556_v29 = vld [vmem:[%s7481_s21 + $0xc8] ss:$16 sps:$4 sm:$0xff]  }
 0x154   : > { %4293 = vmatpush1.bf16.msra.mxu1 %v6495_v30  ;;  %4253 = vmatprep.subr.bf16.mxu0 %v6500_v32 }
 0x155   : > { %4294 = vmatprep.subr.bf16.mxu1 %v6503_v7 }
 0x157   : > { %4254 = vmatpush2.bf16.msra.mxu0 %v6498_v34  ;;  %v6561_v34 = vld [vmem:[%s7481_s21 + $0x10a4] ss:$16 sps:$4 sm:$0xff]  }
 0x158   : > { %4295 = vmatpush2.bf16.msra.mxu1 %v6501_v35  ;;  %4255 = vmatprep.subr.bf16.mxu0 %v6506_v37  ;;  %v6564_v35 = vld [vmem:[%s7481_s21 + $0xac] ss:$16 sps:$4 sm:$0xff]  }
 0x159   : > { %4296 = vmatprep.subr.bf16.mxu1 %v6509_v38  ;;  %v6559_v38 = vld [vmem:[%s7481_s21 + $0x10a0] ss:$16 sps:$4 sm:$0xff]  }
 0x15b   : > { %4256 = vmatpush2.bf16.msra.mxu0 %v6504_v39  ;;  %v6562_v39 = vld [vmem:[%s7481_s21 + $0xa8] ss:$16 sps:$4 sm:$0xff]  }
 0x15c   : > { %4297 = vmatpush2.bf16.msra.mxu1 %v6507_v40  ;;  %4257 = vmatprep.subr.bf16.mxu0 %v6512_v33 }
 0x15d   : > { %4298 = vmatprep.subr.bf16.mxu1 %v6515_v45 }
 0x15f   : > { %4258 = vmatpush2.bf16.msra.mxu0 %v6510_v46 }
 0x160   : > { %4299 = vmatpush2.bf16.msra.mxu1 %v6513_v47  ;;  %4259 = vmatprep.subr.bf16.mxu0 %v6518_v48  ;;  %v6567_v47 = vld [vmem:[%s7481_s21 + $0x1084] ss:$16 sps:$4 sm:$0xff]   ;;  %v6570_v48 = vld [vmem:[%s7481_s21 + $0x8c] ss:$16 sps:$4 sm:$0xff]  }
 0x161   : > { %4300 = vmatprep.subr.bf16.mxu1 %v6521_v51  ;;  %v6565_v51 = vld [vmem:[%s7481_s21 + $0x1080] ss:$16 sps:$4 sm:$0xff]  }
 0x163   : > { %4260 = vmatpush2.bf16.msra.mxu0 %v6516_v52  ;;  %v6573_v52 = vld [vmem:[%s7481_s21 + $0x1064] ss:$16 sps:$4 sm:$0xff]  }
 0x164   : > { %4301 = vmatpush2.bf16.msra.mxu1 %v6519_v53  ;;  %4261 = vmatprep.subr.bf16.mxu0 %v6524_v54  ;;  %v6576_v53 = vld [vmem:[%s7481_s21 + $0x6c] ss:$16 sps:$4 sm:$0xff]   ;;  %v6571_v54 = vld [vmem:[%s7481_s21 + $0x1060] ss:$16 sps:$4 sm:$0xff]  }
 0x165   : > { %4302 = vmatprep.subr.bf16.mxu1 %v6527_v36  ;;  %v6574_v36 = vld [vmem:[%s7481_s21 + $0x68] ss:$16 sps:$4 sm:$0xff]  }
 0x167   : > { %4262 = vmatpush2.bf16.msra.mxu0 %v6522_v57  ;;  %v6579_v57 = vld [vmem:[%s7481_s21 + $0x1044] ss:$16 sps:$4 sm:$0xff]  }
 0x168   : > { %4303 = vmatpush2.bf16.msra.mxu1 %v6525_v58  ;;  %4263 = vmatprep.subr.bf16.mxu0 %v6530_v59  ;;  %v6582_v58 = vld [vmem:[%s7481_s21 + $0x4c] ss:$16 sps:$4 sm:$0xff]   ;;  %v6577_v59 = vld [vmem:[%s7481_s21 + $0x1040] ss:$16 sps:$4 sm:$0xff]  }
 0x169   : > { %4304 = vmatprep.subr.bf16.mxu1 %v6533_v62  ;;  %v6580_v62 = vld [vmem:[%s7481_s21 + $0x48] ss:$16 sps:$4 sm:$0xff]  }
 0x16b   : > { %4264 = vmatpush2.bf16.msra.mxu0 %v6528_v63  ;;  %v6585_v63 = vld [vmem:[%s7481_s21 + $0x1024] ss:$16 sps:$4 sm:$0xff]  }
 0x16c   : > { %4305 = vmatpush2.bf16.msra.mxu1 %v6531_v0  ;;  %4265 = vmatprep.subr.bf16.mxu0 %v6536_v2  ;;  %v6588_v0 = vld [vmem:[%s7481_s21 + $0x2c] ss:$16 sps:$4 sm:$0xff]   ;;  %v6583_v2 = vld [vmem:[%s7481_s21 + $0x1020] ss:$16 sps:$4 sm:$0xff]  }
 0x16d   : > { %4306 = vmatprep.subr.bf16.mxu1 %v6539_v3  ;;  %v6586_v3 = vld [vmem:[%s7481_s21 + $0x28] ss:$16 sps:$4 sm:$0xff]  }
 0x16f   : > { %4266 = vmatpush2.bf16.msra.mxu0 %v6534_v4  ;;  %v6591_v4 = vld [vmem:[%s7481_s21 + $0x1004] ss:$16 sps:$4 sm:$0xff]  }
 0x170   : > { %4307 = vmatpush2.bf16.msra.mxu1 %v6537_v5  ;;  %4267 = vmatprep.subr.bf16.mxu0 %v6542_v6  ;;  %v6594_v5 = vld [vmem:[%s7481_s21 + $0xc] ss:$16 sps:$4 sm:$0xff]   ;;  %v6589_v6 = vld [vmem:[%s7481_s21 + $0x1000] ss:$16 sps:$4 sm:$0xff]  }
 0x171   : > { %4308 = vmatprep.subr.bf16.mxu1 %v6545_v8  ;;  %v6592_v8 = vld [vmem:[%s7481_s21 + $0x8] ss:$16 sps:$4 sm:$0xff]  }
 0x173   : > { %4268 = vmatpush2.bf16.msra.mxu0 %v6540_v9  ;;  %v6597_v9 = vld [vmem:[%s7481_s21 + $0x11e4] ss:$16 sps:$4 sm:$0xff]  }
 0x174   : > { %4309 = vmatpush2.bf16.msra.mxu1 %v6543_v12  ;;  %4319 = vmatprep.subr.bf16.mxu0 %v6549_v13  ;;  %v6600_v12 = vld [vmem:[%s7481_s21 + $0x1ec] ss:$16 sps:$4 sm:$0xff]   ;;  %v6595_v13 = vld [vmem:[%s7481_s21 + $0x11e0] ss:$16 sps:$4 sm:$0xff]  }
 0x175   : > { %4360 = vmatprep.subr.bf16.mxu1 %v6552_v15  ;;  %v6598_v15 = vld [vmem:[%s7481_s21 + $0x1e8] ss:$16 sps:$4 sm:$0xff]  }
 0x176   : > { %v4025_v25 = vpop.f32.mrf.mxu0  ;;  %4270 = vmatmul.mubr.bf16.vlgmr.msra.gmra.mxu0 %v7846_v10 }
 0x177   : > { %v4066_v26 = vpop.f32.mrf.mxu1  ;;  %4311 = vmatmul.mubr.bf16.vlgmr.msra.gmra.mxu1 %v7858_v17  ;;  %4320 = vmatpush1.bf16.msra.mxu0 %v6547_v41  ;;  %v6606_v41 = vld [vmem:[%s7481_s21 + $0x1cc] ss:$16 sps:$4 sm:$0xff]  }
 0x178   : > { %v7871_v30 = vadd.f32 %v4066_v26, %v4025_v25  ;;  %4361 = vmatpush1.bf16.msra.mxu1 %v6550_v20  ;;  %v4027_v32 = vpop.f32.mrf.mxu0  ;;  %4321 = vmatprep.subr.bf16.mxu0 %v6555_v21  ;;  %v6601_v20 = vld [vmem:[%s7481_s21 + $0x11c0] ss:$16 sps:$4 sm:$0xff]   ;;  %v6604_v21 = vld [vmem:[%s7481_s21 + $0x1c8] ss:$16 sps:$4 sm:$0xff]   ;;  %v6612_v25 = vld [vmem:[%s7481_s21 + $0x1ac] ss:$16 sps:$4 sm:$0xff]  }
 0x179   : > { %v4068_v7 = vpop.f32.mrf.mxu1  ;;  %4362 = vmatprep.subr.bf16.mxu1 %v6558_v22  ;;  %4351 = vmatprep.mubr.bf16.mxu0 %v7865_v23  ;;  %v6609_v22 = vld [vmem:[%s7481_s21 + $0x11a4] ss:$16 sps:$4 sm:$0xff]   ;;  %v6607_v26 = vld [vmem:[%s7481_s21 + $0x11a0] ss:$16 sps:$4 sm:$0xff]  }
 0x17a   : > { %v7875_v37 = vadd.f32 %v4068_v7, %v4027_v32  ;;  %4392 = vmatprep.mubr.bf16.mxu1 %v7555_v61  ;;  %v4029_v40 = vpop.f32.mrf.mxu0  ;;  %v6568_v61 = vld [vmem:[%s7481_s21 + $0x88] ss:$16 sps:$4 sm:$0xff]   ;;  %v6618_v32 = vld [vmem:[%s7481_s21 + $0x18c] ss:$16 sps:$4 sm:$0xff]   ;;  %v6613_v7 = vld [vmem:[%s7481_s21 + $0x1180] ss:$16 sps:$4 sm:$0xff]  }
 0x17b   : > { %v4070_v33 = vpop.f32.mrf.mxu1  ;;  %4322 = vmatpush1.bf16.msra.mxu0 %v6553_v28  ;;  %v6610_v28 = vld [vmem:[%s7481_s21 + $0x1a8] ss:$16 sps:$4 sm:$0xff]  }
 0x17c   : > { %4363 = vmatpush1.bf16.msra.mxu1 %v6556_v29  ;;  %v4030_v45 = vpop.f32.mrf.mxu0  ;;  %4323 = vmatprep.subr.bf16.mxu0 %v6561_v34  ;;  %v6615_v29 = vld [vmem:[%s7481_s21 + $0x1184] ss:$16 sps:$4 sm:$0xff]   ;;  %v6616_v34 = vld [vmem:[%s7481_s21 + $0x188] ss:$16 sps:$4 sm:$0xff]  }
 0x17d   : > { %v4071_v46 = vpop.f32.mrf.mxu1  ;;  %4364 = vmatprep.subr.bf16.mxu1 %v6564_v35  ;;  %v6621_v35 = vld [vmem:[%s7481_s21 + $0x1164] ss:$16 sps:$4 sm:$0xff]   ;;  %v6622_v40 = vld [vmem:[%s7481_s21 + $0x168] ss:$16 sps:$4 sm:$0xff]   ;;  %v6630_v45 = vld [vmem:[%s7481_s21 + $0x14c] ss:$16 sps:$4 sm:$0xff]  }
 0x17e   : > { %v6627_v33 = vld [vmem:[%s7481_s21 + $0x1144] ss:$16 sps:$4 sm:$0xff]   ;;  %v6625_v46 = vld [vmem:[%s7481_s21 + $0x1140] ss:$16 sps:$4 sm:$0xff]  }
 0x17f   : > { %4324 = vmatpush1.bf16.msra.mxu0 %v6559_v38  ;;  %v6624_v38 = vld [vmem:[%s7481_s21 + $0x16c] ss:$16 sps:$4 sm:$0xff]  }
 0x180   : > { %4365 = vmatpush1.bf16.msra.mxu1 %v6562_v39  ;;  %4325 = vmatprep.subr.bf16.mxu0 %v6567_v47  ;;  %v6619_v39 = vld [vmem:[%s7481_s21 + $0x1160] ss:$16 sps:$4 sm:$0xff]   ;;  %v6628_v47 = vld [vmem:[%s7481_s21 + $0x148] ss:$16 sps:$4 sm:$0xff]  }
 0x181   : > { %4366 = vmatprep.subr.bf16.mxu1 %v6570_v48  ;;  %v6633_v48 = vld [vmem:[%s7481_s21 + $0x1124] ss:$16 sps:$4 sm:$0xff]  }
 0x183   : > { %4326 = vmatpush1.bf16.msra.mxu0 %v6565_v51  ;;  %v6636_v51 = vld [vmem:[%s7481_s21 + $0x12c] ss:$16 sps:$4 sm:$0xff]  }
 0x184   : > { %4367 = vmatpush1.bf16.msra.mxu1 %v6568_v61  ;;  %4327 = vmatprep.subr.bf16.mxu0 %v6573_v52  ;;  %v6631_v61 = vld [vmem:[%s7481_s21 + $0x1120] ss:$16 sps:$4 sm:$0xff]   ;;  %v6634_v52 = vld [vmem:[%s7481_s21 + $0x128] ss:$16 sps:$4 sm:$0xff]  }
 0x185   : > { %4368 = vmatprep.subr.bf16.mxu1 %v6576_v53  ;;  %v6639_v53 = vld [vmem:[%s7481_s21 + $0x1104] ss:$16 sps:$4 sm:$0xff]  }
 0x187   : > { %4328 = vmatpush1.bf16.msra.mxu0 %v6571_v54  ;;  %v6642_v54 = vld [vmem:[%s7481_s21 + $0x10c] ss:$16 sps:$4 sm:$0xff]  }
 0x188   : > { %4369 = vmatpush1.bf16.msra.mxu1 %v6574_v36  ;;  %4329 = vmatprep.subr.bf16.mxu0 %v6579_v57  ;;  %v6637_v36 = vld [vmem:[%s7481_s21 + $0x1100] ss:$16 sps:$4 sm:$0xff]   ;;  %v6640_v57 = vld [vmem:[%s7481_s21 + $0x108] ss:$16 sps:$4 sm:$0xff]  }
 0x189   : > { %4370 = vmatprep.subr.bf16.mxu1 %v6582_v58  ;;  %v6645_v58 = vld [vmem:[%s7481_s21 + $0x2ec] ss:$16 sps:$4 sm:$0xff]  }
 0x18b   : > { %4330 = vmatpush1.bf16.msra.mxu0 %v6577_v59  ;;  %v6648_v59 = vld [vmem:[%s7481_s21 + $0x4ec] ss:$16 sps:$4 sm:$0xff]  }
 0x18c   : > { %4371 = vmatpush1.bf16.msra.mxu1 %v6580_v62  ;;  %4331 = vmatprep.subr.bf16.mxu0 %v6585_v63  ;;  %v6643_v62 = vld [vmem:[%s7481_s21 + $0x2e8] ss:$16 sps:$4 sm:$0xff]  }
 0x18d   : > { %4372 = vmatprep.subr.bf16.mxu1 %v6588_v0  ;;  %v6646_v63 = vld [vmem:[%s7481_s21 + $0x4e8] ss:$16 sps:$4 sm:$0xff]   ;;  %v7939_v0 = vrot.slane %v7849_v11, %v7543_v50 }
 0x18f   : > { %4332 = vmatpush1.bf16.msra.mxu0 %v6583_v2  ;;  %v6651_v2 = vld [vmem:[%s7481_s21 + $0x2cc] ss:$16 sps:$4 sm:$0xff]  }
 0x190   : > { %4373 = vmatpush1.bf16.msra.mxu1 %v6586_v3  ;;  %4333 = vmatprep.subr.bf16.mxu0 %v6591_v4  ;;  %v6654_v3 = vld [vmem:[%s7481_s21 + $0x4cc] ss:$16 sps:$4 sm:$0xff]   ;;  %v6649_v4 = vld [vmem:[%s7481_s21 + $0x2c8] ss:$16 sps:$4 sm:$0xff]  }
 0x191   : > { %4374 = vmatprep.subr.bf16.mxu1 %v6594_v5  ;;  %v6652_v5 = vld [vmem:[%s7481_s21 + $0x4c8] ss:$16 sps:$4 sm:$0xff]  }
 0x193   : > { %4334 = vmatpush1.bf16.msra.mxu0 %v6589_v6 }
 0x194   : > { %4375 = vmatpush1.bf16.msra.mxu1 %v6592_v8  ;;  %4335 = vmatprep.subr.bf16.mxu0 %v6597_v9 }
 0x195   : > { %4376 = vmatprep.subr.bf16.mxu1 %v6600_v12  ;;  %v6657_v12 = vld [vmem:[%s7481_s21 + $0x2ac] ss:$16 sps:$4 sm:$0xff]  }
 0x197   : > { %4336 = vmatpush2.bf16.msra.mxu0 %v6595_v13  ;;  %v6660_v13 = vld [vmem:[%s7481_s21 + $0x4ac] ss:$16 sps:$4 sm:$0xff]  }
 0x198   : > { %4377 = vmatpush2.bf16.msra.mxu1 %v6598_v15  ;;  %4337 = vmatprep.subr.bf16.mxu0 %v6603_v16 }
 0x199   : > { %4378 = vmatprep.subr.bf16.mxu1 %v6606_v41  ;;  %v6655_v41 = vld [vmem:[%s7481_s21 + $0x2a8] ss:$16 sps:$4 sm:$0xff]  }
 0x19b   : > { %4338 = vmatpush2.bf16.msra.mxu0 %v6601_v20  ;;  %v6658_v20 = vld [vmem:[%s7481_s21 + $0x4a8] ss:$16 sps:$4 sm:$0xff]  }
 0x19c   : > { %4379 = vmatpush2.bf16.msra.mxu1 %v6604_v21  ;;  %4339 = vmatprep.subr.bf16.mxu0 %v6609_v22 }
 0x19d   : > { %4380 = vmatprep.subr.bf16.mxu1 %v6612_v25 }
 0x19f   : > { %4340 = vmatpush2.bf16.msra.mxu0 %v6607_v26  ;;  %v6664_v26 = vld [vmem:[%s7481_s21 + $0x488] ss:$16 sps:$4 sm:$0xff]  }
 0x1a0   : > { %4381 = vmatpush2.bf16.msra.mxu1 %v6610_v28  ;;  %4341 = vmatprep.subr.bf16.mxu0 %v6615_v29  ;;  %v6669_v28 = vld [vmem:[%s7481_s21 + $0x26c] ss:$16 sps:$4 sm:$0xff]  }
 0x1a1   : > { %4382 = vmatprep.subr.bf16.mxu1 %v6618_v32  ;;  %v6672_v29 = vld [vmem:[%s7481_s21 + $0x46c] ss:$16 sps:$4 sm:$0xff]   ;;  %v6667_v32 = vld [vmem:[%s7481_s21 + $0x268] ss:$16 sps:$4 sm:$0xff]  }
 0x1a3   : > { %4342 = vmatpush2.bf16.msra.mxu0 %v6613_v7  ;;  %v6670_v7 = vld [vmem:[%s7481_s21 + $0x468] ss:$16 sps:$4 sm:$0xff]  }
 0x1a4   : > { %4383 = vmatpush2.bf16.msra.mxu1 %v6616_v34  ;;  %4343 = vmatprep.subr.bf16.mxu0 %v6621_v35  ;;  %v6675_v34 = vld [vmem:[%s7481_s21 + $0x24c] ss:$16 sps:$4 sm:$0xff]  }
 0x1a5   : > { %4384 = vmatprep.subr.bf16.mxu1 %v6624_v38  ;;  %v6678_v35 = vld [vmem:[%s7481_s21 + $0x44c] ss:$16 sps:$4 sm:$0xff]   ;;  %v6673_v38 = vld [vmem:[%s7481_s21 + $0x248] ss:$16 sps:$4 sm:$0xff]  }
 0x1a7   : > { %4344 = vmatpush2.bf16.msra.mxu0 %v6619_v39  ;;  %v6676_v39 = vld [vmem:[%s7481_s21 + $0x448] ss:$16 sps:$4 sm:$0xff]  }
 0x1a8   : > { %4385 = vmatpush2.bf16.msra.mxu1 %v6622_v40  ;;  %4345 = vmatprep.subr.bf16.mxu0 %v6627_v33  ;;  %v6681_v40 = vld [vmem:[%s7481_s21 + $0x22c] ss:$16 sps:$4 sm:$0xff]  }
 0x1a9   : > { %4386 = vmatprep.subr.bf16.mxu1 %v6630_v45  ;;  %v6684_v33 = vld [vmem:[%s7481_s21 + $0x42c] ss:$16 sps:$4 sm:$0xff]   ;;  %v6679_v45 = vld [vmem:[%s7481_s21 + $0x228] ss:$16 sps:$4 sm:$0xff]  }
 0x1ab   : > { %4346 = vmatpush2.bf16.msra.mxu0 %v6625_v46  ;;  %v6682_v46 = vld [vmem:[%s7481_s21 + $0x428] ss:$16 sps:$4 sm:$0xff]  }
 0x1ac   : > { %4387 = vmatpush2.bf16.msra.mxu1 %v6628_v47  ;;  %4347 = vmatprep.subr.bf16.mxu0 %v6633_v48  ;;  %v6687_v47 = vld [vmem:[%s7481_s21 + $0x20c] ss:$16 sps:$4 sm:$0xff]  }
 0x1ad   : > { %4388 = vmatprep.subr.bf16.mxu1 %v6636_v51  ;;  %v6690_v48 = vld [vmem:[%s7481_s21 + $0x40c] ss:$16 sps:$4 sm:$0xff]   ;;  %v6685_v51 = vld [vmem:[%s7481_s21 + $0x208] ss:$16 sps:$4 sm:$0xff]  }
 0x1af   : > { %4348 = vmatpush2.bf16.msra.mxu0 %v6631_v61  ;;  %v6688_v61 = vld [vmem:[%s7481_s21 + $0x408] ss:$16 sps:$4 sm:$0xff]  }
 0x1b0   : > { %4389 = vmatpush2.bf16.msra.mxu1 %v6634_v52  ;;  %4349 = vmatprep.subr.bf16.mxu0 %v6639_v53  ;;  %v6693_v52 = vld [vmem:[%s7481_s21 + $0x3ec] ss:$16 sps:$4 sm:$0xff]  }
 0x1b1   : > { %4390 = vmatprep.subr.bf16.mxu1 %v6642_v54  ;;  %v6696_v53 = vld [vmem:[%s7481_s21 + $0x5ec] ss:$16 sps:$4 sm:$0xff]   ;;  %v6691_v54 = vld [vmem:[%s7481_s21 + $0x3e8] ss:$16 sps:$4 sm:$0xff]  }
 0x1b3   : > { %4350 = vmatpush2.bf16.msra.mxu0 %v6637_v36  ;;  %v6694_v36 = vld [vmem:[%s7481_s21 + $0x5e8] ss:$16 sps:$4 sm:$0xff]  }
 0x1b4   : > { %4391 = vmatpush2.bf16.msra.mxu1 %v6640_v57  ;;  %4401 = vmatprep.subr.bf16.mxu0 %v6645_v58  ;;  %v6699_v57 = vld [vmem:[%s7481_s21 + $0x3cc] ss:$16 sps:$4 sm:$0xff]  }
 0x1b5   : > { %4442 = vmatprep.subr.bf16.mxu1 %v6648_v59  ;;  %v6702_v58 = vld [vmem:[%s7481_s21 + $0x5cc] ss:$16 sps:$4 sm:$0xff]   ;;  %v6697_v59 = vld [vmem:[%s7481_s21 + $0x3c8] ss:$16 sps:$4 sm:$0xff]  }
 0x1b6   : > { %v4107_v6 = vpop.f32.mrf.mxu0  ;;  %4352 = vmatmul.mubr.bf16.vlgmr.msra.gmra.mxu0 %v7939_v0 }
 0x1b7   : > { %v4148_v8 = vpop.f32.mrf.mxu1  ;;  %4393 = vmatmul.mubr.bf16.vlgmr.msra.gmra.mxu1 %v7581_v14  ;;  %v4108_v50 = vadd.f32 %v4107_v6, %v7871_v30  ;;  %4402 = vmatpush1.bf16.msra.mxu0 %v6643_v62  ;;  %v6700_v62 = vld [vmem:[%s7481_s21 + $0x5c8] ss:$16 sps:$4 sm:$0xff]   ;;  %v6714_v6 = vld [vmem:[%s7481_s21 + $0x58c] ss:$16 sps:$4 sm:$0xff]  }
 0x1b8   : > { %4443 = vmatpush1.bf16.msra.mxu1 %v6646_v63  ;;  %v4109_v11 = vpop.f32.mrf.mxu0  ;;  %4403 = vmatprep.subr.bf16.mxu0 %v6651_v2  ;;  %v6705_v63 = vld [vmem:[%s7481_s21 + $0x3ac] ss:$16 sps:$4 sm:$0xff]  }
 0x1b9   : > { %v4150_v9 = vpop.f32.mrf.mxu1  ;;  %4444 = vmatprep.subr.bf16.mxu1 %v6654_v3  ;;  %v7950_v15 = vadd.f32 %v4148_v8, %v4108_v50  ;;  %v4110_v16 = vadd.f32 %v4109_v11, %v7875_v37  ;;  %4433 = vmatprep.mubr.bf16.mxu0 %v7562_v1  ;;  %v6663_v37 = vld [vmem:[%s7481_s21 + $0x28c] ss:$16 sps:$4 sm:$0xff]   ;;  %v6703_v3 = vld [vmem:[%s7481_s21 + $0x3a8] ss:$16 sps:$4 sm:$0xff]  }
 0x1ba   : > { %4474 = vmatprep.mubr.bf16.mxu1 %v7587_v18  ;;  %v4111_v14 = vpop.f32.mrf.mxu0  ;;  %v6666_v1 = vld [vmem:[%s7481_s21 + $0x48c] ss:$16 sps:$4 sm:$0xff]   ;;  %v6661_v18 = vld [vmem:[%s7481_s21 + $0x288] ss:$16 sps:$4 sm:$0xff]  }
 0x1bb   : > { %v4152_v30 = vpop.f32.mrf.mxu1  ;;  %v7957_v21 = vadd.f32 %v4150_v9, %v4110_v16  ;;  %4404 = vmatpush1.bf16.msra.mxu0 %v6649_v4  ;;  %v6708_v2 = vld [vmem:[%s7481_s21 + $0x5ac] ss:$16 sps:$4 sm:$0xff]   ;;  %v6706_v4 = vld [vmem:[%s7481_s21 + $0x5a8] ss:$16 sps:$4 sm:$0xff]  }
 0x1bc   : > { %4445 = vmatpush1.bf16.msra.mxu1 %v6652_v5  ;;  %v4112_v22 = vpop.f32.mrf.mxu0  ;;  %4405 = vmatprep.subr.bf16.mxu0 %v6657_v12  ;;  %v6711_v5 = vld [vmem:[%s7481_s21 + $0x38c] ss:$16 sps:$4 sm:$0xff]   ;;  %v6709_v8 = vld [vmem:[%s7481_s21 + $0x388] ss:$16 sps:$4 sm:$0xff]  }
 0x1bd   : > { %v4153_v25 = vpop.f32.mrf.mxu1  ;;  %4446 = vmatprep.subr.bf16.mxu1 %v6660_v13  ;;  %v6712_v50 = vld [vmem:[%s7481_s21 + $0x588] ss:$16 sps:$4 sm:$0xff]   ;;  %v6717_v11 = vld [vmem:[%s7481_s21 + $0x36c] ss:$16 sps:$4 sm:$0xff]  }
 0x1be   : > { %v6720_v9 = vld [vmem:[%s7481_s21 + $0x56c] ss:$16 sps:$4 sm:$0xff]   ;;  %v6715_v12 = vld [vmem:[%s7481_s21 + $0x368] ss:$16 sps:$4 sm:$0xff]  }
 0x1bf   : > { %4406 = vmatpush1.bf16.msra.mxu0 %v6655_v41  ;;  %v6718_v13 = vld [vmem:[%s7481_s21 + $0x568] ss:$16 sps:$4 sm:$0xff]   ;;  %v6723_v16 = vld [vmem:[%s7481_s21 + $0x34c] ss:$16 sps:$4 sm:$0xff]  }
 0x1c0   : > { %4447 = vmatpush1.bf16.msra.mxu1 %v6658_v20  ;;  %4407 = vmatprep.subr.bf16.mxu0 %v6663_v37  ;;  %v6726_v41 = vld [vmem:[%s7481_s21 + $0x54c] ss:$16 sps:$4 sm:$0xff]   ;;  %v6721_v20 = vld [vmem:[%s7481_s21 + $0x348] ss:$16 sps:$4 sm:$0xff]  }
 0x1c1   : > { %4448 = vmatprep.subr.bf16.mxu1 %v6666_v1  ;;  %v6724_v14 = vld [vmem:[%s7481_s21 + $0x548] ss:$16 sps:$4 sm:$0xff]   ;;  %v6729_v30 = vld [vmem:[%s7481_s21 + $0x32c] ss:$16 sps:$4 sm:$0xff]  }
 0x1c2   : > { %v6732_v22 = vld [vmem:[%s7481_s21 + $0x52c] ss:$16 sps:$4 sm:$0xff]   ;;  %v6727_v25 = vld [vmem:[%s7481_s21 + $0x328] ss:$16 sps:$4 sm:$0xff]  }
 0x1c3   : > { %4408 = vmatpush1.bf16.msra.mxu0 %v6661_v18  ;;  %v6730_v37 = vld [vmem:[%s7481_s21 + $0x528] ss:$16 sps:$4 sm:$0xff]   ;;  %v6735_v1 = vld [vmem:[%s7481_s21 + $0x30c] ss:$16 sps:$4 sm:$0xff]  }
 0x1c4   : > { %4449 = vmatpush1.bf16.msra.mxu1 %v6664_v26  ;;  %4409 = vmatprep.subr.bf16.mxu0 %v6669_v28  ;;  %v6738_v18 = vld [vmem:[%s7481_s21 + $0x50c] ss:$16 sps:$4 sm:$0xff]   ;;  %v6733_v26 = vld [vmem:[%s7481_s21 + $0x308] ss:$16 sps:$4 sm:$0xff]  }
 0x1c5   : > { %4450 = vmatprep.subr.bf16.mxu1 %v6672_v29  ;;  %v6736_v28 = vld [vmem:[%s7481_s21 + $0x508] ss:$16 sps:$4 sm:$0xff]   ;;  %v6741_v29 = vld [vmem:[%s7481_s21 + $0x6ec] ss:$16 sps:$4 sm:$0xff]  }
 0x1c7   : > { %4410 = vmatpush1.bf16.msra.mxu0 %v6667_v32  ;;  %v6744_v32 = vld [vmem:[%s7481_s21 + $0x8ec] ss:$16 sps:$4 sm:$0xff]  }
 0x1c8   : > { %4451 = vmatpush1.bf16.msra.mxu1 %v6670_v7  ;;  %4411 = vmatprep.subr.bf16.mxu0 %v6675_v34  ;;  %v6739_v7 = vld [vmem:[%s7481_s21 + $0x6e8] ss:$16 sps:$4 sm:$0xff]  }
 0x1c9   : > { %4452 = vmatprep.subr.bf16.mxu1 %v6678_v35  ;;  %v6742_v34 = vld [vmem:[%s7481_s21 + $0x8e8] ss:$16 sps:$4 sm:$0xff]   ;;  %v6747_v35 = vld [vmem:[%s7481_s21 + $0x6cc] ss:$16 sps:$4 sm:$0xff]  }
 0x1cb   : > { %4412 = vmatpush1.bf16.msra.mxu0 %v6673_v38  ;;  %v6750_v38 = vld [vmem:[%s7481_s21 + $0x8cc] ss:$16 sps:$4 sm:$0xff]  }
 0x1cc   : > { %4453 = vmatpush1.bf16.msra.mxu1 %v6676_v39  ;;  %4413 = vmatprep.subr.bf16.mxu0 %v6681_v40 }
 0x1cd   : > { %4454 = vmatprep.subr.bf16.mxu1 %v6684_v33 }
 0x1cf   : > { %4414 = vmatpush1.bf16.msra.mxu0 %v6679_v45  ;;  %v6745_v45 = vld [vmem:[%s7481_s21 + $0x6c8] ss:$16 sps:$4 sm:$0xff]  }
 0x1d0   : > { %4455 = vmatpush1.bf16.msra.mxu1 %v6682_v46  ;;  %4415 = vmatprep.subr.bf16.mxu0 %v6687_v47  ;;  %v6748_v46 = vld [vmem:[%s7481_s21 + $0x8c8] ss:$16 sps:$4 sm:$0xff]  }
 0x1d1   : > { %4456 = vmatprep.subr.bf16.mxu1 %v6690_v48 }
 0x1d3   : > { %4416 = vmatpush1.bf16.msra.mxu0 %v6685_v51  ;;  %v6753_v51 = vld [vmem:[%s7481_s21 + $0x6ac] ss:$16 sps:$4 sm:$0xff]  }
 0x1d4   : > { %4457 = vmatpush1.bf16.msra.mxu1 %v6688_v61  ;;  %4417 = vmatprep.subr.bf16.mxu0 %v6693_v52  ;;  %v6756_v61 = vld [vmem:[%s7481_s21 + $0x8ac] ss:$16 sps:$4 sm:$0xff]  }
 0x1d5   : > { %4458 = vmatprep.subr.bf16.mxu1 %v6696_v53 }
 0x1d7   : > { %4418 = vmatpush2.bf16.msra.mxu0 %v6691_v54  ;;  %v6751_v54 = vld [vmem:[%s7481_s21 + $0x6a8] ss:$16 sps:$4 sm:$0xff]  }
 0x1d8   : > { %4459 = vmatpush2.bf16.msra.mxu1 %v6694_v36  ;;  %4419 = vmatprep.subr.bf16.mxu0 %v6699_v57  ;;  %v6754_v36 = vld [vmem:[%s7481_s21 + $0x8a8] ss:$16 sps:$4 sm:$0xff]  }
 0x1d9   : > { %4460 = vmatprep.subr.bf16.mxu1 %v6702_v58 }
 0x1db   : > { %4420 = vmatpush2.bf16.msra.mxu0 %v6697_v59  ;;  %v6760_v59 = vld [vmem:[%s7481_s21 + $0x888] ss:$16 sps:$4 sm:$0xff]  }
 0x1dc   : > { %4461 = vmatpush2.bf16.msra.mxu1 %v6700_v62  ;;  %4421 = vmatprep.subr.bf16.mxu0 %v6705_v63  ;;  %v6765_v62 = vld [vmem:[%s7481_s21 + $0x66c] ss:$16 sps:$4 sm:$0xff]  }
 0x1dd   : > { %4462 = vmatprep.subr.bf16.mxu1 %v6708_v2  ;;  %v6768_v63 = vld [vmem:[%s7481_s21 + $0x86c] ss:$16 sps:$4 sm:$0xff]   ;;  %v6763_v2 = vld [vmem:[%s7481_s21 + $0x668] ss:$16 sps:$4 sm:$0xff]  }
 0x1df   : > { %4422 = vmatpush2.bf16.msra.mxu0 %v6703_v3  ;;  %v6766_v3 = vld [vmem:[%s7481_s21 + $0x868] ss:$16 sps:$4 sm:$0xff]  }
 0x1e0   : > { %4463 = vmatpush2.bf16.msra.mxu1 %v6706_v4  ;;  %4423 = vmatprep.subr.bf16.mxu0 %v6711_v5  ;;  %v6771_v4 = vld [vmem:[%s7481_s21 + $0x64c] ss:$16 sps:$4 sm:$0xff]  }
 0x1e1   : > { %4464 = vmatprep.subr.bf16.mxu1 %v6714_v6  ;;  %v6774_v5 = vld [vmem:[%s7481_s21 + $0x84c] ss:$16 sps:$4 sm:$0xff]   ;;  %v6769_v6 = vld [vmem:[%s7481_s21 + $0x648] ss:$16 sps:$4 sm:$0xff]  }
 0x1e3   : > { %4424 = vmatpush2.bf16.msra.mxu0 %v6709_v8  ;;  %v6772_v8 = vld [vmem:[%s7481_s21 + $0x848] ss:$16 sps:$4 sm:$0xff]  }
 0x1e4   : > { %4465 = vmatpush2.bf16.msra.mxu1 %v6712_v50  ;;  %4425 = vmatprep.subr.bf16.mxu0 %v6717_v11  ;;  %v6777_v50 = vld [vmem:[%s7481_s21 + $0x62c] ss:$16 sps:$4 sm:$0xff]  }
 0x1e5   : > { %4466 = vmatprep.subr.bf16.mxu1 %v6720_v9  ;;  %v6780_v11 = vld [vmem:[%s7481_s21 + $0x82c] ss:$16 sps:$4 sm:$0xff]   ;;  %v6775_v9 = vld [vmem:[%s7481_s21 + $0x628] ss:$16 sps:$4 sm:$0xff]  }
 0x1e7   : > { %4426 = vmatpush2.bf16.msra.mxu0 %v6715_v12  ;;  %v6778_v12 = vld [vmem:[%s7481_s21 + $0x828] ss:$16 sps:$4 sm:$0xff]  }
 0x1e8   : > { %4467 = vmatpush2.bf16.msra.mxu1 %v6718_v13  ;;  %4427 = vmatprep.subr.bf16.mxu0 %v6723_v16  ;;  %v6783_v13 = vld [vmem:[%s7481_s21 + $0x60c] ss:$16 sps:$4 sm:$0xff]  }
 0x1e9   : > { %4468 = vmatprep.subr.bf16.mxu1 %v6726_v41  ;;  %v6786_v16 = vld [vmem:[%s7481_s21 + $0x80c] ss:$16 sps:$4 sm:$0xff]   ;;  %v6781_v41 = vld [vmem:[%s7481_s21 + $0x608] ss:$16 sps:$4 sm:$0xff]  }
 0x1eb   : > { %4428 = vmatpush2.bf16.msra.mxu0 %v6721_v20  ;;  %v6784_v20 = vld [vmem:[%s7481_s21 + $0x808] ss:$16 sps:$4 sm:$0xff]  }
 0x1ec   : > { %4469 = vmatpush2.bf16.msra.mxu1 %v6724_v14  ;;  %4429 = vmatprep.subr.bf16.mxu0 %v6729_v30  ;;  %v6789_v14 = vld [vmem:[%s7481_s21 + $0x7ec] ss:$16 sps:$4 sm:$0xff]  }
 0x1ed   : > { %4470 = vmatprep.subr.bf16.mxu1 %v6732_v22  ;;  %v6792_v30 = vld [vmem:[%s7481_s21 + $0x9ec] ss:$16 sps:$4 sm:$0xff]   ;;  %v6787_v22 = vld [vmem:[%s7481_s21 + $0x7e8] ss:$16 sps:$4 sm:$0xff]  }
 0x1ef   : > { %4430 = vmatpush2.bf16.msra.mxu0 %v6727_v25  ;;  %v6790_v25 = vld [vmem:[%s7481_s21 + $0x9e8] ss:$16 sps:$4 sm:$0xff]  }
 0x1f0   : > { %4471 = vmatpush2.bf16.msra.mxu1 %v6730_v37  ;;  %4431 = vmatprep.subr.bf16.mxu0 %v6735_v1  ;;  %v6795_v37 = vld [vmem:[%s7481_s21 + $0x7cc] ss:$16 sps:$4 sm:$0xff]  }
 0x1f1   : > { %4472 = vmatprep.subr.bf16.mxu1 %v6738_v18  ;;  %v6798_v1 = vld [vmem:[%s7481_s21 + $0x9cc] ss:$16 sps:$4 sm:$0xff]   ;;  %v6793_v18 = vld [vmem:[%s7481_s21 + $0x7c8] ss:$16 sps:$4 sm:$0xff]  }
 0x1f3   : > { %4432 = vmatpush2.bf16.msra.mxu0 %v6733_v26  ;;  %v6796_v26 = vld [vmem:[%s7481_s21 + $0x9c8] ss:$16 sps:$4 sm:$0xff]  }
 0x1f4   : > { %4473 = vmatpush2.bf16.msra.mxu1 %v6736_v28  ;;  %4483 = vmatprep.subr.bf16.mxu0 %v6741_v29  ;;  %v6801_v28 = vld [vmem:[%s7481_s21 + $0x7ac] ss:$16 sps:$4 sm:$0xff]  }
 0x1f5   : > { %4524 = vmatprep.subr.bf16.mxu1 %v6744_v32  ;;  %v6804_v29 = vld [vmem:[%s7481_s21 + $0x9ac] ss:$16 sps:$4 sm:$0xff]   ;;  %v6799_v32 = vld [vmem:[%s7481_s21 + $0x7a8] ss:$16 sps:$4 sm:$0xff]  }
 0x1f6   : > { %v4189_v39 = vpop.f32.mrf.mxu0  ;;  %4434 = vmatmul.mubr.bf16.vlgmr.msra.gmra.mxu0 %v7591_v19 }
 0x1f7   : > { %v4230_v40 = vpop.f32.mrf.mxu1  ;;  %4475 = vmatmul.mubr.bf16.vlgmr.msra.gmra.mxu1 %v7664_v27  ;;  %v4190_v33 = vadd.f32 %v4189_v39, %v7950_v15  ;;  %4484 = vmatpush1.bf16.msra.mxu0 %v6739_v7  ;;  %v6802_v7 = vld [vmem:[%s7481_s21 + $0x9a8] ss:$16 sps:$4 sm:$0xff]  }
 0x1f8   : > { %4525 = vmatpush1.bf16.msra.mxu1 %v6742_v34  ;;  %v4191_v47 = vpop.f32.mrf.mxu0  ;;  %4485 = vmatprep.subr.bf16.mxu0 %v6747_v35  ;;  %v6807_v34 = vld [vmem:[%s7481_s21 + $0x78c] ss:$16 sps:$4 sm:$0xff]   ;;  %v6808_v39 = vld [vmem:[%s7481_s21 + $0x988] ss:$16 sps:$4 sm:$0xff]  }
 0x1f9   : > { %v4232_v48 = vpop.f32.mrf.mxu1  ;;  %4526 = vmatprep.subr.bf16.mxu1 %v6750_v38  ;;  %v8024_v52 = vadd.f32 %v4230_v40, %v4190_v33  ;;  %v4192_v19 = vadd.f32 %v4191_v47, %v7957_v21  ;;  %4515 = vmatprep.mubr.bf16.mxu0 %v7599_v24  ;;  %v6759_v24 = vld [vmem:[%s7481_s21 + $0x68c] ss:$16 sps:$4 sm:$0xff]   ;;  %v6757_v21 = vld [vmem:[%s7481_s21 + $0x688] ss:$16 sps:$4 sm:$0xff]  }
 0x1fa   : > { %4556 = vmatprep.mubr.bf16.mxu1 %v7693_v42  ;;  %v4193_v27 = vpop.f32.mrf.mxu0  ;;  %v6762_v42 = vld [vmem:[%s7481_s21 + $0x88c] ss:$16 sps:$4 sm:$0xff]   ;;  %v6805_v38 = vld [vmem:[%s7481_s21 + $0x788] ss:$16 sps:$4 sm:$0xff]  }
 0x1fb   : > { %v4234_v15 = vpop.f32.mrf.mxu1  ;;  %v8029_v53 = vadd.f32 %v4232_v48, %v4192_v19  ;;  %4486 = vmatpush1.bf16.msra.mxu0 %v6745_v45  ;;  %v6810_v35 = vld [vmem:[%s7481_s21 + $0x98c] ss:$16 sps:$4 sm:$0xff]   ;;  %v6811_v45 = vld [vmem:[%s7481_s21 + $0x768] ss:$16 sps:$4 sm:$0xff]  }
 0x1fc   : > { %4527 = vmatpush1.bf16.msra.mxu1 %v6748_v46  ;;  %v4194_v57 = vpop.f32.mrf.mxu0  ;;  %4487 = vmatprep.subr.bf16.mxu0 %v6753_v51  ;;  %v6813_v40 = vld [vmem:[%s7481_s21 + $0x76c] ss:$16 sps:$4 sm:$0xff]   ;;  %v6814_v46 = vld [vmem:[%s7481_s21 + $0x968] ss:$16 sps:$4 sm:$0xff]  }
 0x1fd   : > { %v4235_v58 = vpop.f32.mrf.mxu1  ;;  %4528 = vmatprep.subr.bf16.mxu1 %v6756_v61  ;;  %v6816_v33 = vld [vmem:[%s7481_s21 + $0x96c] ss:$16 sps:$4 sm:$0xff]   ;;  %v6817_v51 = vld [vmem:[%s7481_s21 + $0x748] ss:$16 sps:$4 sm:$0xff]  }
 0x1fe   : > { %v6819_v47 = vld [vmem:[%s7481_s21 + $0x74c] ss:$16 sps:$4 sm:$0xff]   ;;  %v6820_v61 = vld [vmem:[%s7481_s21 + $0x948] ss:$16 sps:$4 sm:$0xff]  }
 0x1ff   : > { %4488 = vmatpush1.bf16.msra.mxu0 %v6751_v54  ;;  %v6822_v48 = vld [vmem:[%s7481_s21 + $0x94c] ss:$16 sps:$4 sm:$0xff]   ;;  %v6823_v15 = vld [vmem:[%s7481_s21 + $0x728] ss:$16 sps:$4 sm:$0xff]  }
 0x200   : > { %4529 = vmatpush1.bf16.msra.mxu1 %v6754_v36  ;;  %4489 = vmatprep.subr.bf16.mxu0 %v6759_v24  ;;  %v6825_v19 = vld [vmem:[%s7481_s21 + $0x72c] ss:$16 sps:$4 sm:$0xff]   ;;  %v6826_v54 = vld [vmem:[%s7481_s21 + $0x928] ss:$16 sps:$4 sm:$0xff]  }
 0x201   : > { %4530 = vmatprep.subr.bf16.mxu1 %v6762_v42  ;;  %v6828_v27 = vld [vmem:[%s7481_s21 + $0x92c] ss:$16 sps:$4 sm:$0xff]   ;;  %v6829_v58 = vld [vmem:[%s7481_s21 + $0x708] ss:$16 sps:$4 sm:$0xff]  }
 0x202   : > { %v6831_v36 = vld [vmem:[%s7481_s21 + $0x70c] ss:$16 sps:$4 sm:$0xff]   ;;  %v6832_v24 = vld [vmem:[%s7481_s21 + $0x908] ss:$16 sps:$4 sm:$0xff]  }
 0x203   : > { %4490 = vmatpush1.bf16.msra.mxu0 %v6757_v21  ;;  %v6834_v57 = vld [vmem:[%s7481_s21 + $0x90c] ss:$16 sps:$4 sm:$0xff]  }
 0x204   : > { %4531 = vmatpush1.bf16.msra.mxu1 %v6760_v59  ;;  %4491 = vmatprep.subr.bf16.mxu0 %v6765_v62  ;;  %v6837_v42 = vld [vmem:[%s7481_s21 + $0xaec] ss:$16 sps:$4 sm:$0xff]   ;;  %v6835_v59 = vld [vmem:[%s7481_s21 + $0xae8] ss:$16 sps:$4 sm:$0xff]  }
 0x205   : > { %4532 = vmatprep.subr.bf16.mxu1 %v6768_v63  ;;  %v6840_v21 = vld [vmem:[%s7481_s21 + $0xcec] ss:$16 sps:$4 sm:$0xff]   ;;  %v6838_v62 = vld [vmem:[%s7481_s21 + $0xce8] ss:$16 sps:$4 sm:$0xff]  }
 0x206   : > { %v6843_v63 = vld [vmem:[%s7481_s21 + $0xacc] ss:$16 sps:$4 sm:$0xff]  }
 0x207   : > { %4492 = vmatpush1.bf16.msra.mxu0 %v6763_v2  ;;  %v6846_v2 = vld [vmem:[%s7481_s21 + $0xccc] ss:$16 sps:$4 sm:$0xff]  }
 0x208   : > { %4533 = vmatpush1.bf16.msra.mxu1 %v6766_v3  ;;  %4493 = vmatprep.subr.bf16.mxu0 %v6771_v4 }
 0x209   : > { %4534 = vmatprep.subr.bf16.mxu1 %v6774_v5 }
 0x20b   : > { %4494 = vmatpush1.bf16.msra.mxu0 %v6769_v6  ;;  %v6841_v6 = vld [vmem:[%s7481_s21 + $0xac8] ss:$16 sps:$4 sm:$0xff]  }
 0x20c   : > { %4535 = vmatpush1.bf16.msra.mxu1 %v6772_v8  ;;  %4495 = vmatprep.subr.bf16.mxu0 %v6777_v50  ;;  %v6844_v8 = vld [vmem:[%s7481_s21 + $0xcc8] ss:$16 sps:$4 sm:$0xff]  }
 0x20d   : > { %4536 = vmatprep.subr.bf16.mxu1 %v6780_v11 }
 0x20f   : > { %4496 = vmatpush1.bf16.msra.mxu0 %v6775_v9  ;;  %v6849_v9 = vld [vmem:[%s7481_s21 + $0xaac] ss:$16 sps:$4 sm:$0xff]  }
 0x210   : > { %4537 = vmatpush1.bf16.msra.mxu1 %v6778_v12  ;;  %4497 = vmatprep.subr.bf16.mxu0 %v6783_v13  ;;  %v6852_v12 = vld [vmem:[%s7481_s21 + $0xcac] ss:$16 sps:$4 sm:$0xff]  }
 0x211   : > { %4538 = vmatprep.subr.bf16.mxu1 %v6786_v16 }
 0x213   : > { %4498 = vmatpush1.bf16.msra.mxu0 %v6781_v41  ;;  %v6847_v41 = vld [vmem:[%s7481_s21 + $0xaa8] ss:$16 sps:$4 sm:$0xff]  }
 0x214   : > { %4539 = vmatpush1.bf16.msra.mxu1 %v6784_v20  ;;  %4499 = vmatprep.subr.bf16.mxu0 %v6789_v14  ;;  %v6850_v20 = vld [vmem:[%s7481_s21 + $0xca8] ss:$16 sps:$4 sm:$0xff]  }
 0x215   : > { %4540 = vmatprep.subr.bf16.mxu1 %v6792_v30 }
 0x217   : > { %4500 = vmatpush2.bf16.msra.mxu0 %v6787_v22  ;;  %v6856_v22 = vld [vmem:[%s7481_s21 + $0xc88] ss:$16 sps:$4 sm:$0xff]  }
 0x218   : > { %4541 = vmatpush2.bf16.msra.mxu1 %v6790_v25  ;;  %4501 = vmatprep.subr.bf16.mxu0 %v6795_v37  ;;  %v6861_v25 = vld [vmem:[%s7481_s21 + $0xa6c] ss:$16 sps:$4 sm:$0xff]  }
 0x219   : > { %4542 = vmatprep.subr.bf16.mxu1 %v6798_v1  ;;  %v6864_v37 = vld [vmem:[%s7481_s21 + $0xc6c] ss:$16 sps:$4 sm:$0xff]   ;;  %v6859_v1 = vld [vmem:[%s7481_s21 + $0xa68] ss:$16 sps:$4 sm:$0xff]  }
 0x21b   : > { %4502 = vmatpush2.bf16.msra.mxu0 %v6793_v18  ;;  %v6862_v18 = vld [vmem:[%s7481_s21 + $0xc68] ss:$16 sps:$4 sm:$0xff]  }
 0x21c   : > { %4543 = vmatpush2.bf16.msra.mxu1 %v6796_v26  ;;  %4503 = vmatprep.subr.bf16.mxu0 %v6801_v28  ;;  %v6867_v26 = vld [vmem:[%s7481_s21 + $0xa4c] ss:$16 sps:$4 sm:$0xff]  }
 0x21d   : > { %4544 = vmatprep.subr.bf16.mxu1 %v6804_v29  ;;  %v6870_v28 = vld [vmem:[%s7481_s21 + $0xc4c] ss:$16 sps:$4 sm:$0xff]   ;;  %v6865_v29 = vld [vmem:[%s7481_s21 + $0xa48] ss:$16 sps:$4 sm:$0xff]  }
 0x21f   : > { %4504 = vmatpush2.bf16.msra.mxu0 %v6799_v32  ;;  %v6868_v32 = vld [vmem:[%s7481_s21 + $0xc48] ss:$16 sps:$4 sm:$0xff]  }
 0x220   : > { %4545 = vmatpush2.bf16.msra.mxu1 %v6802_v7  ;;  %4505 = vmatprep.subr.bf16.mxu0 %v6807_v34  ;;  %v6873_v7 = vld [vmem:[%s7481_s21 + $0xa2c] ss:$16 sps:$4 sm:$0xff]  }
 0x221   : > { %4546 = vmatprep.subr.bf16.mxu1 %v6810_v35  ;;  %v6876_v34 = vld [vmem:[%s7481_s21 + $0xc2c] ss:$16 sps:$4 sm:$0xff]   ;;  %v6871_v35 = vld [vmem:[%s7481_s21 + $0xa28] ss:$16 sps:$4 sm:$0xff]  }
 0x223   : > { %4506 = vmatpush2.bf16.msra.mxu0 %v6805_v38  ;;  %v6874_v38 = vld [vmem:[%s7481_s21 + $0xc28] ss:$16 sps:$4 sm:$0xff]  }
 0x224   : > { %4547 = vmatpush2.bf16.msra.mxu1 %v6808_v39  ;;  %4507 = vmatprep.subr.bf16.mxu0 %v6813_v40  ;;  %v6879_v39 = vld [vmem:[%s7481_s21 + $0xa0c] ss:$16 sps:$4 sm:$0xff]  }
 0x225   : > { %4548 = vmatprep.subr.bf16.mxu1 %v6816_v33  ;;  %v6882_v40 = vld [vmem:[%s7481_s21 + $0xc0c] ss:$16 sps:$4 sm:$0xff]   ;;  %v6877_v33 = vld [vmem:[%s7481_s21 + $0xa08] ss:$16 sps:$4 sm:$0xff]  }
 0x227   : > { %4508 = vmatpush2.bf16.msra.mxu0 %v6811_v45  ;;  %v6880_v45 = vld [vmem:[%s7481_s21 + $0xc08] ss:$16 sps:$4 sm:$0xff]  }
 0x228   : > { %4549 = vmatpush2.bf16.msra.mxu1 %v6814_v46  ;;  %4509 = vmatprep.subr.bf16.mxu0 %v6819_v47  ;;  %v6885_v46 = vld [vmem:[%s7481_s21 + $0xbec] ss:$16 sps:$4 sm:$0xff]  }
 0x229   : > { %4550 = vmatprep.subr.bf16.mxu1 %v6822_v48  ;;  %v6888_v47 = vld [vmem:[%s7481_s21 + $0xdec] ss:$16 sps:$4 sm:$0xff]   ;;  %v6883_v48 = vld [vmem:[%s7481_s21 + $0xbe8] ss:$16 sps:$4 sm:$0xff]  }
 0x22b   : > { %4510 = vmatpush2.bf16.msra.mxu0 %v6817_v51  ;;  %v6886_v51 = vld [vmem:[%s7481_s21 + $0xde8] ss:$16 sps:$4 sm:$0xff]  }
 0x22c   : > { %4551 = vmatpush2.bf16.msra.mxu1 %v6820_v61  ;;  %4511 = vmatprep.subr.bf16.mxu0 %v6825_v19  ;;  %v6891_v61 = vld [vmem:[%s7481_s21 + $0xbcc] ss:$16 sps:$4 sm:$0xff]  }
 0x22d   : > { %4552 = vmatprep.subr.bf16.mxu1 %v6828_v27  ;;  %v6894_v19 = vld [vmem:[%s7481_s21 + $0xdcc] ss:$16 sps:$4 sm:$0xff]   ;;  %v6889_v27 = vld [vmem:[%s7481_s21 + $0xbc8] ss:$16 sps:$4 sm:$0xff]  }
 0x22f   : > { %4512 = vmatpush2.bf16.msra.mxu0 %v6823_v15  ;;  %v6892_v15 = vld [vmem:[%s7481_s21 + $0xdc8] ss:$16 sps:$4 sm:$0xff]  }
 0x230   : > { %4553 = vmatpush2.bf16.msra.mxu1 %v6826_v54  ;;  %4513 = vmatprep.subr.bf16.mxu0 %v6831_v36  ;;  %v6897_v54 = vld [vmem:[%s7481_s21 + $0xbac] ss:$16 sps:$4 sm:$0xff]  }
 0x231   : > { %4554 = vmatprep.subr.bf16.mxu1 %v6834_v57  ;;  %v6900_v36 = vld [vmem:[%s7481_s21 + $0xdac] ss:$16 sps:$4 sm:$0xff]   ;;  %v6895_v57 = vld [vmem:[%s7481_s21 + $0xba8] ss:$16 sps:$4 sm:$0xff]  }
 0x233   : > { %4514 = vmatpush2.bf16.msra.mxu0 %v6829_v58  ;;  %v6898_v58 = vld [vmem:[%s7481_s21 + $0xda8] ss:$16 sps:$4 sm:$0xff]  }
 0x234   : > { %4555 = vmatpush2.bf16.msra.mxu1 %v6832_v24  ;;  %4565 = vmatprep.subr.bf16.mxu0 %v6837_v42  ;;  %v6903_v24 = vld [vmem:[%s7481_s21 + $0xb8c] ss:$16 sps:$4 sm:$0xff]  }
 0x235   : > { %4606 = vmatprep.subr.bf16.mxu1 %v6840_v21  ;;  %v6906_v42 = vld [vmem:[%s7481_s21 + $0xd8c] ss:$16 sps:$4 sm:$0xff]   ;;  %v6901_v21 = vld [vmem:[%s7481_s21 + $0xb88] ss:$16 sps:$4 sm:$0xff]  }
 0x236   : > { %v4271_v3 = vpop.f32.mrf.mxu0  ;;  %4516 = vmatmul.mubr.bf16.vlgmr.msra.gmra.mxu0 %v7671_v31 }
 0x237   : > { %v4312_v4 = vpop.f32.mrf.mxu1  ;;  %4557 = vmatmul.mubr.bf16.vlgmr.msra.gmra.mxu1 %v7762_v49  ;;  %v4272_v5 = vadd.f32 %v4271_v3, %v8024_v52  ;;  %4566 = vmatpush1.bf16.msra.mxu0 %v6835_v59  ;;  %v6904_v59 = vld [vmem:[%s7481_s21 + $0xd88] ss:$16 sps:$4 sm:$0xff]  }
 0x238   : > { %4607 = vmatpush1.bf16.msra.mxu1 %v6838_v62  ;;  %v4273_v50 = vpop.f32.mrf.mxu0  ;;  %4567 = vmatprep.subr.bf16.mxu0 %v6843_v63  ;;  %v6909_v62 = vld [vmem:[%s7481_s21 + $0xb6c] ss:$16 sps:$4 sm:$0xff]   ;;  %v6910_v3 = vld [vmem:[%s7481_s21 + $0xd68] ss:$16 sps:$4 sm:$0xff]  }
 0x239   : > { %v4314_v11 = vpop.f32.mrf.mxu1  ;;  %4608 = vmatprep.subr.bf16.mxu1 %v6846_v2  ;;  %v8098_v13 = vadd.f32 %v4312_v4, %v4272_v5  ;;  %v4274_v31 = vadd.f32 %v4273_v50, %v8029_v53  ;;  %4597 = vmatprep.mubr.bf16.mxu0 %v7698_v43  ;;  %v6855_v43 = vld [vmem:[%s7481_s21 + $0xa8c] ss:$16 sps:$4 sm:$0xff]   ;;  %v6853_v53 = vld [vmem:[%s7481_s21 + $0xa88] ss:$16 sps:$4 sm:$0xff]  }
 0x23a   : > { %4638 = vmatprep.mubr.bf16.mxu1 %v7769_v55  ;;  %v4275_v49 = vpop.f32.mrf.mxu0  ;;  %v6858_v55 = vld [vmem:[%s7481_s21 + $0xc8c] ss:$16 sps:$4 sm:$0xff]   ;;  %v6907_v2 = vld [vmem:[%s7481_s21 + $0xb68] ss:$16 sps:$4 sm:$0xff]  }
 0x23b   : > { %v4316_v52 = vpop.f32.mrf.mxu1  ;;  %v8103_v16 = vadd.f32 %v4314_v11, %v4274_v31  ;;  %4568 = vmatpush1.bf16.msra.mxu0 %v6841_v6  ;;  %v6912_v63 = vld [vmem:[%s7481_s21 + $0xd6c] ss:$16 sps:$4 sm:$0xff]   ;;  %v6913_v6 = vld [vmem:[%s7481_s21 + $0xb48] ss:$16 sps:$4 sm:$0xff]  }
 0x23c   : > { %4609 = vmatpush1.bf16.msra.mxu1 %v6844_v8  ;;  %v4276_v14 = vpop.f32.mrf.mxu0  ;;  %4569 = vmatprep.subr.bf16.mxu0 %v6849_v9  ;;  %v6915_v4 = vld [vmem:[%s7481_s21 + $0xb4c] ss:$16 sps:$4 sm:$0xff]   ;;  %v6916_v8 = vld [vmem:[%s7481_s21 + $0xd48] ss:$16 sps:$4 sm:$0xff]  }
 0x23d   : > { %v4317_v30 = vpop.f32.mrf.mxu1  ;;  %4610 = vmatprep.subr.bf16.mxu1 %v6852_v12  ;;  %v6918_v5 = vld [vmem:[%s7481_s21 + $0xd4c] ss:$16 sps:$4 sm:$0xff]   ;;  %v6919_v9 = vld [vmem:[%s7481_s21 + $0xb28] ss:$16 sps:$4 sm:$0xff]  }
 0x23e   : > { %v6921_v50 = vld [vmem:[%s7481_s21 + $0xb2c] ss:$16 sps:$4 sm:$0xff]   ;;  %v6922_v12 = vld [vmem:[%s7481_s21 + $0xd28] ss:$16 sps:$4 sm:$0xff]  }
 0x23f   : > { %4570 = vmatpush1.bf16.msra.mxu0 %v6847_v41  ;;  %v6924_v11 = vld [vmem:[%s7481_s21 + $0xd2c] ss:$16 sps:$4 sm:$0xff]   ;;  %v6925_v52 = vld [vmem:[%s7481_s21 + $0xb08] ss:$16 sps:$4 sm:$0xff]  }
 0x240   : > { %4611 = vmatpush1.bf16.msra.mxu1 %v6850_v20  ;;  %4571 = vmatprep.subr.bf16.mxu0 %v6855_v43  ;;  %v6927_v31 = vld [vmem:[%s7481_s21 + $0xb0c] ss:$16 sps:$4 sm:$0xff]   ;;  %v6928_v41 = vld [vmem:[%s7481_s21 + $0xd08] ss:$16 sps:$4 sm:$0xff]  }
 0x241   : > { %4612 = vmatprep.subr.bf16.mxu1 %v6858_v55  ;;  %v6930_v49 = vld [vmem:[%s7481_s21 + $0xd0c] ss:$16 sps:$4 sm:$0xff]   ;;  %v6931_v30 = vld [vmem:[%s7481_s21 + $0xee8] ss:$16 sps:$4 sm:$0xff]  }
 0x242   : > { %v6933_v20 = vld [vmem:[%s7481_s21 + $0xeec] ss:$16 sps:$4 sm:$0xff]   ;;  %v6934_v43 = vld [vmem:[%s7481_s21 + $0x10e8] ss:$16 sps:$4 sm:$0xff]  }
 0x243   : > { %4572 = vmatpush1.bf16.msra.mxu0 %v6853_v53  ;;  %v6936_v14 = vld [vmem:[%s7481_s21 + $0x10ec] ss:$16 sps:$4 sm:$0xff]  }
 0x244   : > { %4613 = vmatpush1.bf16.msra.mxu1 %v6856_v22  ;;  %4573 = vmatprep.subr.bf16.mxu0 %v6861_v25  ;;  %v6939_v55 = vld [vmem:[%s7481_s21 + $0xecc] ss:$16 sps:$4 sm:$0xff]  }
 0x245   : > { %4614 = vmatprep.subr.bf16.mxu1 %v6864_v37  ;;  %v6942_v53 = vld [vmem:[%s7481_s21 + $0x10cc] ss:$16 sps:$4 sm:$0xff]  }
 0x247   : > { %4574 = vmatpush1.bf16.msra.mxu0 %v6859_v1  ;;  %v6937_v1 = vld [vmem:[%s7481_s21 + $0xec8] ss:$16 sps:$4 sm:$0xff]  }
 0x248   : > { %4615 = vmatpush1.bf16.msra.mxu1 %v6862_v18  ;;  %4575 = vmatprep.subr.bf16.mxu0 %v6867_v26  ;;  %v6940_v18 = vld [vmem:[%s7481_s21 + $0x10c8] ss:$16 sps:$4 sm:$0xff]  }
 0x249   : > { %4616 = vmatprep.subr.bf16.mxu1 %v6870_v28 }
 0x24b   : > { %4576 = vmatpush1.bf16.msra.mxu0 %v6865_v29  ;;  %v6945_v29 = vld [vmem:[%s7481_s21 + $0xeac] ss:$16 sps:$4 sm:$0xff]  }
 0x24c   : > { %4617 = vmatpush1.bf16.msra.mxu1 %v6868_v32  ;;  %4577 = vmatprep.subr.bf16.mxu0 %v6873_v7  ;;  %v6948_v32 = vld [vmem:[%s7481_s21 + $0x10ac] ss:$16 sps:$4 sm:$0xff]  }
 0x24d   : > { %4618 = vmatprep.subr.bf16.mxu1 %v6876_v34  ;;  %v6943_v34 = vld [vmem:[%s7481_s21 + $0xea8] ss:$16 sps:$4 sm:$0xff]  }
 0x24f   : > { %4578 = vmatpush1.bf16.msra.mxu0 %v6871_v35  ;;  %v6946_v35 = vld [vmem:[%s7481_s21 + $0x10a8] ss:$16 sps:$4 sm:$0xff]  }
 0x250   : > { %4619 = vmatpush1.bf16.msra.mxu1 %v6874_v38  ;;  %4579 = vmatprep.subr.bf16.mxu0 %v6879_v39  ;;  %v6949_v39 = vld [vmem:[%s7481_s21 + $0xe88] ss:$16 sps:$4 sm:$0xff]  }
 0x251   : > { %4620 = vmatprep.subr.bf16.mxu1 %v6882_v40  ;;  %v6952_v40 = vld [vmem:[%s7481_s21 + $0x1088] ss:$16 sps:$4 sm:$0xff]  }
 0x253   : > { %4580 = vmatpush1.bf16.msra.mxu0 %v6877_v33  ;;  %v6957_v33 = vld [vmem:[%s7481_s21 + $0xe6c] ss:$16 sps:$4 sm:$0xff]  }
 0x254   : > { %4621 = vmatpush1.bf16.msra.mxu1 %v6880_v45  ;;  %4581 = vmatprep.subr.bf16.mxu0 %v6885_v46  ;;  %v6960_v45 = vld [vmem:[%s7481_s21 + $0x106c] ss:$16 sps:$4 sm:$0xff]   ;;  %v6955_v46 = vld [vmem:[%s7481_s21 + $0xe68] ss:$16 sps:$4 sm:$0xff]  }
 0x255   : > { %4622 = vmatprep.subr.bf16.mxu1 %v6888_v47  ;;  %v6958_v47 = vld [vmem:[%s7481_s21 + $0x1068] ss:$16 sps:$4 sm:$0xff]  }
 0x257   : > { %4582 = vmatpush2.bf16.msra.mxu0 %v6883_v48  ;;  %v6963_v48 = vld [vmem:[%s7481_s21 + $0xe4c] ss:$16 sps:$4 sm:$0xff]  }
 0x258   : > { %4623 = vmatpush2.bf16.msra.mxu1 %v6886_v51  ;;  %4583 = vmatprep.subr.bf16.mxu0 %v6891_v61  ;;  %v6966_v51 = vld [vmem:[%s7481_s21 + $0x104c] ss:$16 sps:$4 sm:$0xff]   ;;  %v6961_v61 = vld [vmem:[%s7481_s21 + $0xe48] ss:$16 sps:$4 sm:$0xff]  }
 0x259   : > { %4624 = vmatprep.subr.bf16.mxu1 %v6894_v19  ;;  %v6964_v19 = vld [vmem:[%s7481_s21 + $0x1048] ss:$16 sps:$4 sm:$0xff]  }
 0x25b   : > { %4584 = vmatpush2.bf16.msra.mxu0 %v6889_v27  ;;  %v6969_v27 = vld [vmem:[%s7481_s21 + $0xe2c] ss:$16 sps:$4 sm:$0xff]  }
 0x25c   : > { %4625 = vmatpush2.bf16.msra.mxu1 %v6892_v15  ;;  %4585 = vmatprep.subr.bf16.mxu0 %v6897_v54  ;;  %v6972_v15 = vld [vmem:[%s7481_s21 + $0x102c] ss:$16 sps:$4 sm:$0xff]   ;;  %v6967_v54 = vld [vmem:[%s7481_s21 + $0xe28] ss:$16 sps:$4 sm:$0xff]  }
 0x25d   : > { %4626 = vmatprep.subr.bf16.mxu1 %v6900_v36  ;;  %v6970_v36 = vld [vmem:[%s7481_s21 + $0x1028] ss:$16 sps:$4 sm:$0xff]  }
 0x25f   : > { %4586 = vmatpush2.bf16.msra.mxu0 %v6895_v57  ;;  %v6975_v57 = vld [vmem:[%s7481_s21 + $0xe0c] ss:$16 sps:$4 sm:$0xff]  }
 0x260   : > { %4627 = vmatpush2.bf16.msra.mxu1 %v6898_v58  ;;  %4587 = vmatprep.subr.bf16.mxu0 %v6903_v24  ;;  %v6978_v58 = vld [vmem:[%s7481_s21 + $0x100c] ss:$16 sps:$4 sm:$0xff]   ;;  %v6973_v24 = vld [vmem:[%s7481_s21 + $0xe08] ss:$16 sps:$4 sm:$0xff]  }
 0x261   : > { %4628 = vmatprep.subr.bf16.mxu1 %v6906_v42  ;;  %v6976_v42 = vld [vmem:[%s7481_s21 + $0x1008] ss:$16 sps:$4 sm:$0xff]  }
 0x263   : > { %4588 = vmatpush2.bf16.msra.mxu0 %v6901_v21  ;;  %v6981_v21 = vld [vmem:[%s7481_s21 + $0xfec] ss:$16 sps:$4 sm:$0xff]  }
 0x264   : > { %4629 = vmatpush2.bf16.msra.mxu1 %v6904_v59  ;;  %4589 = vmatprep.subr.bf16.mxu0 %v6909_v62  ;;  %v6984_v59 = vld [vmem:[%s7481_s21 + $0x11ec] ss:$16 sps:$4 sm:$0xff]   ;;  %v6979_v62 = vld [vmem:[%s7481_s21 + $0xfe8] ss:$16 sps:$4 sm:$0xff]  }
 0x265   : > { %4630 = vmatprep.subr.bf16.mxu1 %v6912_v63  ;;  %v6982_v63 = vld [vmem:[%s7481_s21 + $0x11e8] ss:$16 sps:$4 sm:$0xff]  }
 0x267   : > { %4590 = vmatpush2.bf16.msra.mxu0 %v6907_v2  ;;  %v6987_v2 = vld [vmem:[%s7481_s21 + $0xfcc] ss:$16 sps:$4 sm:$0xff]  }
 0x268   : > { %4631 = vmatpush2.bf16.msra.mxu1 %v6910_v3  ;;  %4591 = vmatprep.subr.bf16.mxu0 %v6915_v4  ;;  %v6990_v3 = vld [vmem:[%s7481_s21 + $0x11cc] ss:$16 sps:$4 sm:$0xff]   ;;  %v6985_v4 = vld [vmem:[%s7481_s21 + $0xfc8] ss:$16 sps:$4 sm:$0xff]  }
 0x269   : > { %4632 = vmatprep.subr.bf16.mxu1 %v6918_v5  ;;  %v6988_v5 = vld [vmem:[%s7481_s21 + $0x11c8] ss:$16 sps:$4 sm:$0xff]  }
 0x26b   : > { %4592 = vmatpush2.bf16.msra.mxu0 %v6913_v6  ;;  %v6993_v6 = vld [vmem:[%s7481_s21 + $0xfac] ss:$16 sps:$4 sm:$0xff]  }
 0x26c   : > { %4633 = vmatpush2.bf16.msra.mxu1 %v6916_v8  ;;  %4593 = vmatprep.subr.bf16.mxu0 %v6921_v50  ;;  %v6996_v8 = vld [vmem:[%s7481_s21 + $0x11ac] ss:$16 sps:$4 sm:$0xff]   ;;  %v6991_v50 = vld [vmem:[%s7481_s21 + $0xfa8] ss:$16 sps:$4 sm:$0xff]  }
 0x26d   : > { %4634 = vmatprep.subr.bf16.mxu1 %v6924_v11  ;;  %v6994_v11 = vld [vmem:[%s7481_s21 + $0x11a8] ss:$16 sps:$4 sm:$0xff]  }
 0x26f   : > { %4594 = vmatpush2.bf16.msra.mxu0 %v6919_v9  ;;  %v6999_v9 = vld [vmem:[%s7481_s21 + $0xf8c] ss:$16 sps:$4 sm:$0xff]  }
 0x270   : > { %4635 = vmatpush2.bf16.msra.mxu1 %v6922_v12  ;;  %4595 = vmatprep.subr.bf16.mxu0 %v6927_v31  ;;  %v7002_v12 = vld [vmem:[%s7481_s21 + $0x118c] ss:$16 sps:$4 sm:$0xff]   ;;  %v6997_v31 = vld [vmem:[%s7481_s21 + $0xf88] ss:$16 sps:$4 sm:$0xff]  }
 0x271   : > { %4636 = vmatprep.subr.bf16.mxu1 %v6930_v49  ;;  %v7000_v49 = vld [vmem:[%s7481_s21 + $0x1188] ss:$16 sps:$4 sm:$0xff]  }
 0x273   : > { %4596 = vmatpush2.bf16.msra.mxu0 %v6925_v52  ;;  %v7005_v52 = vld [vmem:[%s7481_s21 + $0xf6c] ss:$16 sps:$4 sm:$0xff]  }
 0x274   : > { %4637 = vmatpush2.bf16.msra.mxu1 %v6928_v41  ;;  %4647 = vmatprep.subr.bf16.mxu0 %v6933_v20  ;;  %v7008_v41 = vld [vmem:[%s7481_s21 + $0x116c] ss:$16 sps:$4 sm:$0xff]   ;;  %v7003_v20 = vld [vmem:[%s7481_s21 + $0xf68] ss:$16 sps:$4 sm:$0xff]  }
 0x275   : > { %4688 = vmatprep.subr.bf16.mxu1 %v6936_v14  ;;  %v7006_v14 = vld [vmem:[%s7481_s21 + $0x1168] ss:$16 sps:$4 sm:$0xff]  }
 0x276   : > { %v4353_v22 = vpop.f32.mrf.mxu0  ;;  %4598 = vmatmul.mubr.bf16.vlgmr.msra.gmra.mxu0 %v7773_v56 }
 0x277   : > { %v8165_v25 = vpop.f32.mrf.mxu1  ;;  %4639 = vmatmul.mubr.bf16.vlgmr.msra.gmra.mxu1 %v7846_v10  ;;  %v8170_v37 = vadd.f32 %v4353_v22, %v8098_v13  ;;  %4648 = vmatpush1.bf16.msra.mxu0 %v6931_v30  ;;  %v7011_v30 = vld [vmem:[%s7481_s21 + $0xf4c] ss:$16 sps:$4 sm:$0xff]  }
 0x278   : > { %4689 = vmatpush1.bf16.msra.mxu1 %v6934_v43  ;;  %v4355_v26 = vpop.f32.mrf.mxu0  ;;  %4649 = vmatprep.subr.bf16.mxu0 %v6939_v55  ;;  %v7014_v43 = vld [vmem:[%s7481_s21 + $0x114c] ss:$16 sps:$4 sm:$0xff]   ;;  %v7009_v55 = vld [vmem:[%s7481_s21 + $0xf48] ss:$16 sps:$4 sm:$0xff]  }
 0x279   : > { %v8174_v28 = vpop.f32.mrf.mxu1  ;;  %4690 = vmatprep.subr.bf16.mxu1 %v6942_v53  ;;  %v8179_v56 = vadd.f32 %v4355_v26, %v8103_v16  ;;  %4679 = vmatprep.mubr.bf16.mxu0 %v7781_v60  ;;  %v6951_v60 = vld [vmem:[%s7481_s21 + $0xe8c] ss:$16 sps:$4 sm:$0xff]   ;;  %v7012_v53 = vld [vmem:[%s7481_s21 + $0x1148] ss:$16 sps:$4 sm:$0xff]  }
 0x27a   : > { %4720 = vmatprep.mubr.bf16.mxu1 %v7865_v23  ;;  %v4357_v10 = vpop.f32.mrf.mxu0  ;;  %v6954_v23 = vld [vmem:[%s7481_s21 + $0x108c] ss:$16 sps:$4 sm:$0xff]   ;;  %v7018_v26 = vld [vmem:[%s7481_s21 + $0x1128] ss:$16 sps:$4 sm:$0xff]  }
 0x27b   : > { %v4398_v13 = vpop.f32.mrf.mxu1  ;;  %v4733_v7 = vcombine.low %v8170_v37, %v8179_v56  ;;  %4650 = vmatpush1.bf16.msra.mxu0 %v6937_v1  ;;  %v7017_v22 = vld [vmem:[%s7481_s21 + $0xf2c] ss:$16 sps:$4 sm:$0xff]   ;;  %v7021_v10 = vld [vmem:[%s7481_s21 + $0xf08] ss:$16 sps:$4 sm:$0xff]  }
 0x27c   : > { %4691 = vmatpush1.bf16.msra.mxu1 %v6940_v18  ;;  %v4358_v38 = vpop.f32.mrf.mxu0  ;;  %4651 = vmatprep.subr.bf16.mxu0 %v6945_v29  ;;  %v7020_v1 = vld [vmem:[%s7481_s21 + $0x112c] ss:$16 sps:$4 sm:$0xff]   ;;  %v7015_v18 = vld [vmem:[%s7481_s21 + $0xf28] ss:$16 sps:$4 sm:$0xff]  }
 0x27d   : > { %v4399_v16 = vpop.f32.mrf.mxu1  ;;  %4692 = vmatprep.subr.bf16.mxu1 %v6948_v32  ;;  %v7023_v29 = vld [vmem:[%s7481_s21 + $0xf0c] ss:$16 sps:$4 sm:$0xff]   ;;  %v7024_v13 = vld [vmem:[%s7481_s21 + $0x1108] ss:$16 sps:$4 sm:$0xff]  }
 0x27e   : > { %v7026_v32 = vld [vmem:[%s7481_s21 + $0x110c] ss:$16 sps:$4 sm:$0xff]  }
 0x27f   : > { %4652 = vmatpush1.bf16.msra.mxu0 %v6943_v34 }
 0x280   : > { %4693 = vmatpush1.bf16.msra.mxu1 %v6946_v35  ;;  %4653 = vmatprep.subr.bf16.mxu0 %v6951_v60 }
 0x281   : > { %4694 = vmatprep.subr.bf16.mxu1 %v6954_v23 }
 0x283   : > { %4654 = vmatpush1.bf16.msra.mxu0 %v6949_v39 }
 0x284   : > { %4695 = vmatpush1.bf16.msra.mxu1 %v6952_v40  ;;  %4655 = vmatprep.subr.bf16.mxu0 %v6957_v33 }
 0x285   : > { %4696 = vmatprep.subr.bf16.mxu1 %v6960_v45 }
 0x287   : > { %4656 = vmatpush1.bf16.msra.mxu0 %v6955_v46 }
 0x288   : > { %4697 = vmatpush1.bf16.msra.mxu1 %v6958_v47  ;;  %4657 = vmatprep.subr.bf16.mxu0 %v6963_v48 }
 0x289   : > { %4698 = vmatprep.subr.bf16.mxu1 %v6966_v51 }
 0x28b   : > { %4658 = vmatpush1.bf16.msra.mxu0 %v6961_v61 }
 0x28c   : > { %4699 = vmatpush1.bf16.msra.mxu1 %v6964_v19  ;;  %4659 = vmatprep.subr.bf16.mxu0 %v6969_v27 }
 0x28d   : > { %4700 = vmatprep.subr.bf16.mxu1 %v6972_v15 }
 0x28f   : > { %4660 = vmatpush1.bf16.msra.mxu0 %v6967_v54 }
 0x290   : > { %4701 = vmatpush1.bf16.msra.mxu1 %v6970_v36  ;;  %4661 = vmatprep.subr.bf16.mxu0 %v6975_v57 }
 0x291   : > { %4702 = vmatprep.subr.bf16.mxu1 %v6978_v58 }
 0x293   : > { %4662 = vmatpush1.bf16.msra.mxu0 %v6973_v24 }
 0x294   : > { %4703 = vmatpush1.bf16.msra.mxu1 %v6976_v42  ;;  %4663 = vmatprep.subr.bf16.mxu0 %v6981_v21 }
 0x295   : > { %4704 = vmatprep.subr.bf16.mxu1 %v6984_v59 }
 0x297   : > { %4664 = vmatpush2.bf16.msra.mxu0 %v6979_v62 }
 0x298   : > { %4705 = vmatpush2.bf16.msra.mxu1 %v6982_v63  ;;  %4665 = vmatprep.subr.bf16.mxu0 %v6987_v2 }
 0x299   : > { %4706 = vmatprep.subr.bf16.mxu1 %v6990_v3 }
 0x29b   : > { %4666 = vmatpush2.bf16.msra.mxu0 %v6985_v4  ;;  %v7296_v4 = vmov 1983009808  }
 0x29c   : > { %4707 = vmatpush2.bf16.msra.mxu1 %v6988_v5  ;;  %4667 = vmatprep.subr.bf16.mxu0 %v6993_v6  ;;  %v4736_v5 = vunpack.c.l.s4 %v7296_v4 }
 0x29d   : > { %4708 = vmatprep.subr.bf16.mxu1 %v6996_v8 }
 0x29f   : > { %4668 = vmatpush2.bf16.msra.mxu0 %v6991_v50 }
 0x2a0   : > { %4709 = vmatpush2.bf16.msra.mxu1 %v6994_v11  ;;  %4669 = vmatprep.subr.bf16.mxu0 %v6999_v9  ;;  %v4737_v11 = vunpack.c.0.s8 %v4736_v5 }
 0x2a1   : > { %4710 = vmatprep.subr.bf16.mxu1 %v7002_v12 }
 0x2a3   : > { %4670 = vmatpush2.bf16.msra.mxu0 %v6997_v31 }
 0x2a4   : > { %4711 = vmatpush2.bf16.msra.mxu1 %v7000_v49  ;;  %4671 = vmatprep.subr.bf16.mxu0 %v7005_v52 }
 0x2a5   : > { %4712 = vmatprep.subr.bf16.mxu1 %v7008_v41 }
 0x2a7   : > { %4672 = vmatpush2.bf16.msra.mxu0 %v7003_v20 }
 0x2a8   : > { %4713 = vmatpush2.bf16.msra.mxu1 %v7006_v14  ;;  %4673 = vmatprep.subr.bf16.mxu0 %v7011_v30  ;;  %v8244_v14 = vsub.s32 %v4737_v11, %v7535_v44 }
 0x2a9   : > { %4714 = vmatprep.subr.bf16.mxu1 %v7014_v43 }
 0x2ab   : > { %4674 = vmatpush2.bf16.msra.mxu0 %v7009_v55 }
 0x2ac   : > { %4715 = vmatpush2.bf16.msra.mxu1 %v7012_v53  ;;  %4675 = vmatprep.subr.bf16.mxu0 %v7017_v22 }
 0x2ad   : > { %4716 = vmatprep.subr.bf16.mxu1 %v7020_v1  ;;  %v4741_v1 = vrot.slane %v4733_v7, %v8244_v14 }
 0x2af   : > { %4676 = vmatpush2.bf16.msra.mxu0 %v7015_v18 }
 0x2b0   : > { %4717 = vmatpush2.bf16.msra.mxu1 %v7018_v26  ;;  %4677 = vmatprep.subr.bf16.mxu0 %v7023_v29  ;;  %v390_v26 = vld [vmem:[#allocation2] sm:$0xff] }
 0x2b1   : > { %4718 = vmatprep.subr.bf16.mxu1 %v7026_v32 }
 0x2b3   : > { %4678 = vmatpush2.bf16.msra.mxu0 %v7021_v10 }
 0x2b4   : > { %4719 = vmatpush2.bf16.msra.mxu1 %v7024_v13 }
 0x2b6   : > { %v4435_v34 = vpop.f32.mrf.mxu0  ;;  %4680 = vmatmul.mubr.bf16.vlgmr.msra.gmra.mxu0 %v7858_v17 }
 0x2b7   : > { %v4476_v35 = vpop.f32.mrf.mxu1  ;;  %4721 = vmatmul.mubr.bf16.vlgmr.msra.gmra.mxu1 %v7939_v0  ;;  %v4436_v38 = vadd.f32 %v4435_v34, %v8165_v25 }
 0x2b8   : > { %v4437_v16 = vpop.f32.mrf.mxu0 }
 0x2b9   : > { %v4478_v60 = vpop.f32.mrf.mxu1  ;;  %v4477_v23 = vadd.f32 %v4476_v35, %v4436_v38  ;;  %v4438_v39 = vadd.f32 %v4437_v16, %v8174_v28 }
 0x2ba   : > { %v4439_v40 = vpop.f32.mrf.mxu0 }
 0x2bb   : > { %v4480_v33 = vpop.f32.mrf.mxu1  ;;  %v4479_v45 = vadd.f32 %v4478_v60, %v4438_v39 }
 0x2bc   : > { %v4440_v46 = vpop.f32.mrf.mxu0 }
 0x2bd   : > { %v4481_v47 = vpop.f32.mrf.mxu1 }
 0x2f6   : > { %v4517_v48 = vpop.f32.mrf.mxu0 }
 0x2f7   : > { %v4558_v51 = vpop.f32.mrf.mxu1  ;;  %v4518_v61 = vadd.f32 %v4517_v48, %v4477_v23 }
 0x2f8   : > { %v4519_v19 = vpop.f32.mrf.mxu0 }
 0x2f9   : > { %v4560_v27 = vpop.f32.mrf.mxu1  ;;  %v4559_v17 = vadd.f32 %v4558_v51, %v4518_v61  ;;  %v4520_v15 = vadd.f32 %v4519_v19, %v4479_v45 }
 0x2fa   : > { %v4521_v0 = vpop.f32.mrf.mxu0 }
 0x2fb   : > { %v4562_v54 = vpop.f32.mrf.mxu1  ;;  %v4561_v25 = vadd.f32 %v4560_v27, %v4520_v15 }
 0x2fc   : > { %v4522_v36 = vpop.f32.mrf.mxu0 }
 0x2fd   : > { %v4563_v57 = vpop.f32.mrf.mxu1 }
 0x336   : > { %v4599_v58 = vpop.f32.mrf.mxu0 }
 0x337   : > { %v4640_v24 = vpop.f32.mrf.mxu1  ;;  %v4600_v28 = vadd.f32 %v4599_v58, %v4559_v17 }
 0x338   : > { %v4601_v42 = vpop.f32.mrf.mxu0 }
 0x339   : > { %v4642_v21 = vpop.f32.mrf.mxu1  ;;  %v4641_v59 = vadd.f32 %v4640_v24, %v4600_v28  ;;  %v4602_v6 = vadd.f32 %v4601_v42, %v4561_v25 }
 0x33a   : > { %v4603_v62 = vpop.f32.mrf.mxu0 }
 0x33b   : > { %v4644_v63 = vpop.f32.mrf.mxu1  ;;  %v4643_v9 = vadd.f32 %v4642_v21, %v4602_v6 }
 0x33c   : > { %v4604_v2 = vpop.f32.mrf.mxu0 }
 0x33d   : > { %v4645_v3 = vpop.f32.mrf.mxu1 }
 0x376   : > { %v4681_v8 = vpop.f32.mrf.mxu0 }
 0x377   : > { %v4722_v50 = vpop.f32.mrf.mxu1  ;;  %v4682_v12 = vadd.f32 %v4681_v8, %v4641_v59 }
 0x378   : > { %v4683_v31 = vpop.f32.mrf.mxu0 }
 0x379   : > { %v4724_v49 = vpop.f32.mrf.mxu1  ;;  %v4684_v52 = vadd.f32 %v4683_v31, %v4643_v9  ;;  %v4723_v30 = vadd.f32 %v4722_v50, %v4682_v12 }
 0x37a   : > { %v4685_v41 = vpop.f32.mrf.mxu0 }
 0x37b   : > { %v4726_v20 = vpop.f32.mrf.mxu1  ;;  %v4725_v43 = vadd.f32 %v4724_v49, %v4684_v52 }
 0x37c   : > { %v4686_v55 = vpop.f32.mrf.mxu0 }
 0x37d   : > { %v4727_v53 = vpop.f32.mrf.mxu1  ;;  %v4734_v22 = vcombine.low %v4723_v30, %v4725_v43 }
 0x37f   : > { %v4748_v18 = vrot.slane %v4734_v22, %v8244_v14 }
 0x381   : > { %v4749_v29 = vcombine.low %v4741_v1, %v4748_v18  ;;  %4756 = sbr.rel (%p5951_p6) target bundleno = 1340 (0x53c), region = 76 }
 0x383   : > { %v4751_v32 = vadd.f32 %v4749_v29, %v390_v26 }
 0x385   : > { %4752 = vst [vmem:[#allocation2] sm:$0xff] %v4751_v32 }
 0x386   : > { %v7027_v10 = vld [vmem:[%s8395_s3 + $0x78] sm:$0xff]   ;;  %v7031_v7 = vld [vmem:[%s8395_s3 + $0x70] sm:$0xff]   ;;  %v7035_v16 = vld [vmem:[%s8395_s3 + $0x68] sm:$0xff]   ;;  %v4762_v36 = vsub.s32 0, %v7535_v44  ;;  %v4766_v58 = vsub.s32 1, %v7535_v44  ;;  %v4770_v28 = vsub.s32 2, %v7535_v44 }
 0x387   : > { %v7028_v13 = vld [vmem:[%s8395_s3 + $0xf8] sm:$0xff]   ;;  %5997 = vmatprep.subr.bf16.mxu0 %v7027_v10  ;;  %v7032_v34 = vld [vmem:[%s8395_s3 + $0xf0] sm:$0xff]   ;;  %v7036_v60 = vld [vmem:[%s8395_s3 + $0xe8] sm:$0xff]   ;;  %v4774_v21 = vsub.s32 3, %v7535_v44  ;;  %v7297_v18 = vmov 0.0   ;;  %vm7298_vm0 = vmmov 0  }
 0x388   : > { %v7029_v37 = vld [vmem:[%s8395_s3 + $0x38] sm:$0xff]   ;;  %6019 = vmatprep.subr.bf16.mxu1 %v7028_v13  ;;  %v7033_v35 = vld [vmem:[%s8395_s3 + $0x30] sm:$0xff]   ;;  %v7037_v23 = vld [vmem:[%s8395_s3 + $0x28] sm:$0xff]   ;;  %vm5190_vm1 = vcmask 261120   ;;  %vm5234_vm2 = vcmask 41984  }
 0x389   : > { %v7030_v56 = vld [vmem:[%s8395_s3 + $0xb8] sm:$0xff]   ;;  %5998 = vmatpush3.bf16.msra.mxu0 %v7029_v37  ;;  %v7034_v38 = vld [vmem:[%s8395_s3 + $0xb0] sm:$0xff]   ;;  %v7038_v39 = vld [vmem:[%s8395_s3 + $0xa8] sm:$0xff]  }
 0x38a   : > { %6020 = vmatpush3.bf16.msra.mxu1 %v7030_v56  ;;  %5999 = vmatprep.subr.bf16.mxu0 %v7031_v7  ;;  %v7039_v40 = vld [vmem:[%s8395_s3 + $0x60] sm:$0xff]   ;;  %v7043_v47 = vld [vmem:[%s8395_s3 + $0x58] sm:$0xff]   ;;  %v7047_v19 = vld [vmem:[%s8395_s3 + $0x50] sm:$0xff]  }
 0x38b   : > { %6021 = vmatprep.subr.bf16.mxu1 %v7032_v34  ;;  %v7040_v33 = vld [vmem:[%s8395_s3 + $0xe0] sm:$0xff]   ;;  %v7044_v48 = vld [vmem:[%s8395_s3 + $0xd8] sm:$0xff]   ;;  %v7048_v27 = vld [vmem:[%s8395_s3 + $0xd0] sm:$0xff]  }
 0x38c   : > { %v7041_v45 = vld [vmem:[%s8395_s3 + $0x20] sm:$0xff]   ;;  %v7045_v51 = vld [vmem:[%s8395_s3 + $0x18] sm:$0xff]   ;;  %v7049_v17 = vld [vmem:[%s8395_s3 + $0x10] sm:$0xff]  }
 0x38d   : > { %6000 = vmatpush3.bf16.msra.mxu0 %v7033_v35  ;;  %v7042_v46 = vld [vmem:[%s8395_s3 + $0xa0] sm:$0xff]   ;;  %v7046_v61 = vld [vmem:[%s8395_s3 + $0x98] sm:$0xff]   ;;  %v7050_v15 = vld [vmem:[%s8395_s3 + $0x90] sm:$0xff]  }
 0x38e   : > { %6022 = vmatpush3.bf16.msra.mxu1 %v7034_v38  ;;  %6001 = vmatprep.subr.bf16.mxu0 %v7035_v16  ;;  %v7051_v0 = vld [vmem:[%s8395_s3 + $0x48] sm:$0xff]   ;;  %v7055_v24 = vld [vmem:[%s8395_s3 + $0x40] sm:$0xff]   ;;  %v5952_v32 = vld [vmem:[#allocation9] ss:$0 sm:$0xff] }
 0x38f   : > { %6023 = vmatprep.subr.bf16.mxu1 %v7036_v60  ;;  %v7052_v54 = vld [vmem:[%s8395_s3 + $0xc8] sm:$0xff]   ;;  %v7056_v42 = vld [vmem:[%s8395_s3 + $0xc0] sm:$0xff]  }
 0x390   : > { %v7053_v25 = vld [vmem:[%s8395_s3 + $0x8] sm:$0xff]   ;;  %v7057_v59 = vld [vmem:[%s8395_s3] sm:$0xff]  }
 0x391   : > { %6002 = vmatpush3.bf16.msra.mxu0 %v7037_v23  ;;  %v7054_v57 = vld [vmem:[%s8395_s3 + $0x88] sm:$0xff]   ;;  %v7058_v62 = vld [vmem:[%s8395_s3 + $0x80] sm:$0xff]  }
 0x392   : > { %6024 = vmatpush3.bf16.msra.mxu1 %v7038_v39  ;;  %6003 = vmatprep.subr.bf16.mxu0 %v7039_v40  ;;  %v4758_v63 = vld [vmem:[#allocation8] sm:$0xf]  ;;  %v4757_v11 = vld [vmem:[#allocation2] sm:$0xff]  ;;  %v5985_v40 = vld [vmem:[#allocation11] ss:$0 sm:$0xff] }
 0x393   : > { %6025 = vmatprep.subr.bf16.mxu1 %v7040_v33  ;;  %v4763_v2 = vrot.slane %v4758_v63, %v4762_v36  ;;  %v4767_v3 = vrot.slane %v4758_v63, %v4766_v58  ;;  %v4771_v4 = vrot.slane %v4758_v63, %v4770_v28  ;;  %v4775_v5 = vrot.slane %v4758_v63, %v4774_v21  ;;  %v7059_v1 = vld [vmem:[%s8397_s5 + $0x8] sm:$0xff]  }
 0x395   : > { %6004 = vmatpush3.bf16.msra.mxu0 %v7041_v45  ;;  %v4776_v6 = vcombine.low %v4763_v2, %v4767_v3  ;;  %v4777_v8 = vcombine.low %v4771_v4, %v4775_v5 }
 0x396   : > { %6026 = vmatpush3.bf16.msra.mxu1 %v7042_v46  ;;  %6005 = vmatprep.subr.bf16.mxu0 %v7043_v47 }
 0x397   : > { %6027 = vmatprep.subr.bf16.mxu1 %v7044_v48  ;;  %v4784_v44 = vrot.slane %v4776_v6, %v8244_v14  ;;  %v4791_v50 = vrot.slane %v4777_v8, %v8244_v14 }
 0x399   : > { %6006 = vmatpush3.bf16.msra.mxu0 %v7045_v51  ;;  %v4792_v9 = vcombine.low %v4784_v44, %v4791_v50 }
 0x39a   : > { %6028 = vmatpush3.bf16.msra.mxu1 %v7046_v61  ;;  %6007 = vmatprep.subr.bf16.mxu0 %v7047_v19 }
 0x39b   : > { %6029 = vmatprep.subr.bf16.mxu1 %v7048_v27  ;;  %v4794_v12 = vadd.f32 %v4792_v9, %v4757_v11 }
 0x39d   : > { %6008 = vmatpush3.bf16.msra.mxu0 %v7049_v17  ;;  %v4795_v31 = vmax.f32 %v4794_v12, 0.0 }
 0x39e   : > { %6030 = vmatpush3.bf16.msra.mxu1 %v7050_v15  ;;  %6009 = vmatprep.subr.bf16.mxu0 %v7051_v0 }
 0x39f   : > { %6031 = vmatprep.subr.bf16.mxu1 %v7052_v54  ;;  %v4804_v49 = vrot.slane %v4795_v31, %v8244_v14  ;;  %v4797_v52 = vcombine.high %v4795_v31, %v4795_v31 }
 0x3a1   : > { %6010 = vmatpush3.bf16.msra.mxu0 %v7053_v25  ;;  %v4812_v41 = vcombine.high %v4804_v49, %v4804_v49  ;;  %v4811_v20 = vrot.slane %v4797_v52, %v8244_v14  ;;  %v4818_v30 = vpack.c.bf16 %v4804_v49, %v4804_v49  ;;  %v7060_v14 = vld [vmem:[%s8397_s5] sm:$0xff]  }
 0x3a2   : > { %6032 = vmatpush3.bf16.msra.mxu1 %v7054_v57  ;;  %6011 = vmatprep.subr.bf16.mxu0 %v7055_v24 }
 0x3a3   : > { %6033 = vmatprep.subr.bf16.mxu1 %v7056_v42  ;;  %v4819_v43 = vpack.c.bf16 %v4812_v41, %v4812_v41  ;;  %v4813_v55 = vcombine.high %v4811_v20, %v4811_v20  ;;  %v4820_v53 = vpack.c.bf16 %v4811_v20, %v4811_v20 }
 0x3a5   : > { %6012 = vmatpush3.bf16.msra.mxu0 %v7057_v59  ;;  %5117 = vmatprep.mubr.bf16.mxu0 %v4819_v43  ;;  %v4821_v22 = vpack.c.bf16 %v4813_v55, %v4813_v55 }
 0x3a6   : > { %6034 = vmatpush3.bf16.msra.mxu1 %v7058_v62  ;;  %6044 = vmatprep.subr.bf16.mxu0 %v7297_v18 }
 0x3a7   : > { %5157 = vmatprep.mubr.bf16.mxu1 %v4821_v22 }
 0x3a8   : > { %5118 = vmatmul.mubr.bf16.vlgmr.msra.gmra.mxu0 %v4818_v30 }
 0x3a9   : > { %5158 = vmatmul.mubr.bf16.vlgmr.msra.gmra.mxu1 %v4820_v53  ;;  %6045 = vmatpush3.bf16.msra.mxu0 %v7059_v1 }
 0x3aa   : > { %6046 = vmatprep.subr.bf16.mxu0 %v7297_v18  ;;  %6048 = vmatprep.mubr.msk.bf16.mxu0 %vm7298_vm0, %v7297_v18 }
 0x3ad   : > { %6047 = vmatpush3.bf16.msra.mxu0 %v7060_v14 }
 0x468   : > { %v6013_v26 = vpop.f32.mrf.mxu0 }
 0x469   : > { %v6035_v29 = vpop.f32.mrf.mxu1 }
 0x46a   : > { %v6014_v10 = vpop.f32.mrf.mxu0 }
 0x46b   : > { %v6015_v13 = vadd.f32 %v6014_v10, %v6013_v26  ;;  %v6036_v37 = vpop.f32.mrf.mxu1 }
 0x46c   : > { %v6016_v56 = vpop.f32.mrf.mxu0  ;;  %v6037_v34 = vadd.f32 %v6036_v37, %v6035_v29 }
 0x46d   : > { %v5120_v7 = vadd.f32 %v6015_v13, %v5952_v32  ;;  %v6038_v35 = vpop.f32.mrf.mxu1 }
 0x46e   : > { %v6017_v38 = vpop.f32.mrf.mxu0 }
 0x46f   : > { %v5160_v16 = vadd.f32 %v6037_v34, %v5120_v7  ;;  %v6039_v60 = vpop.f32.mrf.mxu1 }
 0x471   : > { %v5165_v23 = vmax.f32 %v5160_v16, 0.0 }
 0x473   : > { %v5166_v39 = vpack.c.bf16 %v5165_v23, %v5165_v23 }
 0x475   : > { %6049 = vmatmul.mubr.msk.bf16.vlgmr.msra.gmra.mxu0 %vm5190_vm1, %v5166_v39 }
 0x535   : > { %v5228_v33 = vpop.f32.mrf.mxu0 }
 0x536   : > { %v5229_v45 = vadd.f32 %v5985_v40, %v5228_v33 }
 0x537   : > { %v6050_v46 = vpop.f32.mrf.mxu0 }
 0x538   : > { %5235 = vst.msk [vmem:[#allocation12] sm:$0x3] %vm5234_vm2, %v5229_v45 }
 0x539   : > { %v5231_v47 = vpop.f32.mrf.mxu0 }
 0x53b   : > { %v6051_v48 = vpop.f32.mrf.mxu0 }
 0x53c PF: > { %p6100_p9 = scmp.eq.s32.totalorder %s7369_s30, 2  ;;  %s7299_s27 = smov [#allocation12]  }
 0x53d   : > { %s5245_s14 = sshll.u32 %s7299_s27, 4  ;;  %s5246_s14 = int_to_ptr.vmem [resolvable:$true] %s5245_s14 }
 0x53e   : > { %s7195_s23 = scalar_lea.vmem %s5246_s14, 32  ;;  %p7202_p0 = scmp.lt.s32.totalorder %s5246_s14, %s5246_s14 }
 0x53f   : > { %p7196_p10 = scmp.ne.s32.totalorder %s5246_s14, %s7195_s23  ;;  %p7203_p1 = scmp.lt.s32.totalorder %s7195_s23, %s7195_s23 }
 0x541   : > { %p7197_p12 = pnand %p7196_p10, %p6100_p9  ;;  %p7204_p4 = por %p7203_p1, %p7202_p0 }
 0x543   : > { %p7198_p11 = pneg %p7197_p12 }
 0x545   : > { %p7205_p7 = pnand %p7204_p4, %p7198_p11 }
 0x547   : > { %7208 = shalt.err (!%p7205_p7)
}
 0x548   : > { %6073 = dma.vmem_to_hbm [thread:$0]  (%p6100_p9), %s5246_s14, 32, %s8399_s7, [#allocation5]  }
 0x549   : > { %7260 = dma.done.wait (%p6100_p9), [#allocation5], 32  }
 0x54a   : > { %7262 = vsyncadd (%p6100_p9), [#allocation5], 4294967264 }
 0x54b PF: > { %s25_s29 = sadd.s32 1, %s7285_s29   ;;  %s8419_s24 = smov %s7269_s25 }
 0x54c   : > { %p22_p5 = scmp.ge.s32.totalorder %s25_s29, 5   ;;  %s8420_s25 = smov %s7273_s26 }
 0x54d   : > { %s8421_s26 = smov %s7447_s20  ;;  %s8422_s27 = smov %s7281_s28 }
 0x54e   : > { %s8423_s28 = smov %s8425_s15  ;;  %24 = sbr.rel (!%p22_p5) target bundleno = 13 (0xd), region = 119 }
 0x553   :  { %5258 = vsyncpa [#allocation4], 1 }
 0x554   :  { %5260 = vsyncpa [#allocation4 + $0x1], 1 }
 0x555   :  { %5261 = vsyncpa [#allocation7], 1 }
 0x556   :  { %5263 = vsyncpa [#allocation7 + $0x1], 1 }
 0x557   :  { %5264 = vsyncpa [#allocation10], 1 }
 0x558   :  { %5265 = vsyncpa [#allocation5], 1 }
 0x559   :  { %5267 = vsyncpa [#allocation5 + $0x1], 1 }

</bundles_post_ra>
